<compile_context>
chip_gen: v6e
topology: v6e:2x2x1
jax: 0.10.0
libtpu: 0.0.40
codegen_flags: <defaults>
</compile_context>

<pallas_src>
import jax
import jax.numpy as jnp
from jax.experimental import pallas as pl
from jax.experimental.pallas import tpu as pltpu


def _round_up(x, m):
    return ((x + m - 1) // m) * m


def _vmem_capacity_bytes():
    try:
        return int(pltpu.get_tpu_info().vmem_capacity_bytes)
    except Exception:
        return 64 * 1024 * 1024  # conservative: v7x per-TC physical VMEM


_VMEM_PHYS = _vmem_capacity_bytes()
# Budget for the double-buffered bf16 L tiles.  Everything else (resident
# X_stack, weight blocks, output tiles, accumulator) stays well under ~8 MiB
# at these feature widths, so total VMEM stays inside physical capacity on
# every generation (64 MiB/TC on v7x, 128 MiB on v5e/v6e).
_L_STREAM_BUDGET = min(max(_VMEM_PHYS - 24 * 1024 * 1024, 16 * 1024 * 1024),
                       64 * 1024 * 1024)


def _choose_tiles(n):
    """Returns (n_pad, tm, tk).

    * n padded to a multiple of 128 (16 for tiny graphs): bounds the quadratic
      padding waste on the streamed L operand.
    * tm: largest multiple-of-8 divisor of n_pad <= 512 leaving >= 2 row tiles
      (both v7x TensorCores get work; multi-MiB L tile per grid step).
    * tk: full 2*n_pad (single K step) when the double-buffered bf16 L tile
      fits the VMEM budget; otherwise the largest multiple-of-128 divisor of
      2*n_pad that still fits.
    """
    if n <= 128:
        n_pad = _round_up(n, 16)
        tm = max(8, n_pad // 2)
        return n_pad, tm, 2 * n_pad
    n_pad = _round_up(n, 128)
    tm = 128
    cap = min(512, n_pad // 2)
    for cand in range(8, cap + 1, 8):
        if n_pad % cand == 0:
            tm = cand
    full_k = 2 * n_pad
    if 2 * tm * full_k * 2 <= _L_STREAM_BUDGET:
        tk = full_k
    else:
        d = full_k // 128
        tk = 128
        max_mult = max(1, _L_STREAM_BUDGET // (2 * tm * 128 * 2))
        for cand in range(min(d, max_mult), 0, -1):
            if d % cand == 0:
                tk = 128 * cand
                break
    return n_pad, tm, tk


# ---------------------------------------------------------------------------
# Kernel factory
# ---------------------------------------------------------------------------
def _make_conv_kernel(*, hidden, apply_relu, has_head, single_k, tk):
    """One SigMaNetConv layer (+ complex ReLU) (+ fused Conv1d/log_softmax)."""

    def kernel(l_ref, xs_ref, xc_ref, w0_ref, w1_ref, b_ref, *rest):
        if has_head:
            wc_ref, bc_ref, o_ref = rest[:3]
            scratch = rest[3:]
        else:
            o_ref = rest[0]
            scratch = rest[1:]

        if single_k:
            xs = xs_ref[...]
        else:
            k = pl.program_id(1)
            xs = xs_ref[pl.ds(pl.multiple_of(k * tk, tk), tk), :]

        # Complex propagation: one bf16 MXU matmul streaming the L tile once.
        p = jnp.dot(l_ref[...], xs, preferred_element_type=jnp.float32)

        def finalize(prop):
            out = (jnp.dot(xc_ref[...], w0_ref[...],
                           preferred_element_type=jnp.float32)
                   + jnp.dot(prop, w1_ref[...],
                             preferred_element_type=jnp.float32)
                   + b_ref[...])
            if apply_relu:
                real = out[:, :hidden]
                imag = out[:, hidden:]
                mask = (real >= 0.0).astype(out.dtype)
                out = jnp.concatenate([mask * real, mask * imag], axis=-1)
            if has_head:
                # TODO(synk): dropout before the 1x1 Conv1d is identity (eval).
                logits = (jnp.dot(out, wc_ref[...],
                                  preferred_element_type=jnp.float32)
                          + bc_ref[...])
                m = jnp.max(logits, axis=-1, keepdims=True)
                z = logits - m
                lse = jnp.log(jnp.sum(jnp.exp(z), axis=-1, keepdims=True))
                o_ref[...] = z - lse
            else:
                o_ref[...] = out

        if single_k:
            # Full-K: no accumulator round trip; finalize directly.
            finalize(p)
        else:
            acc_ref = scratch[0]

            @pl.when(k == 0)
            def _():
                acc_ref[...] = jnp.zeros_like(acc_ref)

            acc_ref[...] += p

            @pl.when(k == pl.num_programs(1) - 1)
            def _():
                finalize(acc_ref[...])

    return kernel


# ---------------------------------------------------------------------------
# Per-layer wrapper
# ---------------------------------------------------------------------------
def sigmanet_conv_layer(x_cat, l_stack, weight, bias, *, apply_relu,
                        head=None, tm, tk):
    """x_cat: (n_pad, 2F) f32 [xr|xi];  l_stack: (n_pad, 2*n_pad) bf16 [Lr|Li];
    weight: (K+1, F, H) f32."""
    n_pad, two_f = x_cat.shape
    f_in = two_f // 2
    hidden = weight.shape[-1]
    num_k = (2 * n_pad) // tk
    single_k = num_k == 1

    # Folded block weights: 8 weight matmuls -> 2 lane-dense ones.
    w0, w1 = weight[0], weight[1]
    zeros = jnp.zeros_like(w0)
    w0_blk = jnp.concatenate(
        [jnp.concatenate([w0, w0], axis=1),
         jnp.concatenate([-w0, w0], axis=1)], axis=0)            # (2F, 2H)
    w1_blk = jnp.concatenate(
        [jnp.concatenate([w1, zeros], axis=1),
         jnp.concatenate([zeros, w1], axis=1)], axis=0)          # (2F, 2H)
    b_cat = jnp.concatenate([bias, bias]).reshape(1, 2 * hidden)

    # Stacked node features so the complex propagation is one matmul.
    xr = x_cat[:, :f_in]
    xi = x_cat[:, f_in:]
    x_stack = jnp.concatenate(
        [x_cat, jnp.concatenate([-xi, xr], axis=-1)], axis=0
    ).astype(jnp.bfloat16)                                       # (2*n_pad, 2F)

    grid = (n_pad // tm, num_k)

    in_specs = [
        pl.BlockSpec((tm, tk), lambda i, k: (i, k)),             # L_stack tile
        pl.BlockSpec((2 * n_pad, two_f), lambda i, k: (0, 0)),   # X_stack (VMEM-resident)
        pl.BlockSpec((tm, two_f), lambda i, k: (i, 0)),          # X_cat tile
        pl.BlockSpec((two_f, 2 * hidden), lambda i, k: (0, 0)),  # W0 block
        pl.BlockSpec((two_f, 2 * hidden), lambda i, k: (0, 0)),  # W1 block
        pl.BlockSpec((1, 2 * hidden), lambda i, k: (0, 0)),      # bias
    ]
    operands = [l_stack, x_stack, x_cat, w0_blk, w1_blk, b_cat]

    has_head = head is not None
    if has_head:
        wc, bc = head
        label_dim = wc.shape[-1]
        in_specs += [
            pl.BlockSpec((2 * hidden, label_dim), lambda i, k: (0, 0)),
            pl.BlockSpec((1, label_dim), lambda i, k: (0, 0)),
        ]
        operands += [wc, bc.reshape(1, label_dim)]
        out_w = label_dim
    else:
        out_w = 2 * hidden

    out_shape = jax.ShapeDtypeStruct((n_pad, out_w), jnp.float32)
    out_specs = pl.BlockSpec((tm, out_w), lambda i, k: (i, 0))

    scratch_shapes = [] if single_k else [pltpu.VMEM((tm, two_f), jnp.float32)]

    # Explicit scoped-VMEM budget (raised above per-generation defaults so the
    # large streamed L tiles are legal, bounded by physical VMEM).
    vmem_bytes = (
        2 * tm * tk * 2                        # L_stack tiles (bf16, 2 buffers)
        + 2 * (2 * n_pad) * two_f * 2          # resident X_stack (bf16)
        + 2 * tm * two_f * 4                   # X_cat tiles
        + 2 * 2 * two_f * (2 * hidden) * 4     # W0 / W1 blocks
        + 2 * tm * out_w * 4                   # output tiles
        + (0 if single_k else tm * two_f * 4)  # f32 accumulator
        + (2 * (2 * hidden + 1) * out_w * 4 if has_head else 0)
    )
    vmem_limit = max(vmem_bytes + (4 << 20), 32 << 20)
    vmem_limit = min(vmem_limit, int(_VMEM_PHYS * 0.9))

    kernel = _make_conv_kernel(hidden=hidden, apply_relu=apply_relu,
                               has_head=has_head, single_k=single_k, tk=tk)

    return pl.pallas_call(
        kernel,
        out_shape=out_shape,
        grid=grid,
        in_specs=in_specs,
        out_specs=out_specs,
        scratch_shapes=scratch_shapes,
        compiler_params=pltpu.CompilerParams(
            dimension_semantics=("parallel", "arbitrary"),
            vmem_limit_bytes=vmem_limit),
    )(*operands)


# ---------------------------------------------------------------------------
# Full model forward
# ---------------------------------------------------------------------------
def sigmanet_forward(x_real, x_imag, params, l_real, l_imag, activation=True,
                     tiles=None):
    n = x_real.shape[0]
    n_pad, tm, tk = _choose_tiles(n) if tiles is None else tiles
    pad_n = n_pad - n

    # Invariant: padded L rows AND columns are zero, so valid output rows can
    # never read the (nonzero after layer-1 bias/ReLU) padded feature rows.
    # Keep this if the padding / quantization scheme changes.
    lr = jnp.pad(l_real, ((0, pad_n), (0, pad_n)))
    li = jnp.pad(l_imag, ((0, pad_n), (0, pad_n)))
    l_stack = jnp.concatenate([lr, li], axis=1).astype(jnp.bfloat16)

    x_cat = jnp.pad(
        jnp.concatenate([x_real, x_imag], axis=-1).astype(jnp.float32),
        ((0, pad_n), (0, 0)))

    chebs = params["chebs"]
    for idx, (w, b) in enumerate(chebs):
        is_last = idx == len(chebs) - 1
        head = (params["wc"], params["bc"]) if is_last else None
        x_cat = sigmanet_conv_layer(x_cat, l_stack, w, b,
                                    apply_relu=activation, head=head,
                                    tm=tm, tk=tk)
    # x_cat now holds per-node log-probs (n_pad, label_dim); drop padding and
    # match the PyTorch Conv1d output layout (1, label_dim, N).
    return x_cat[:n].T[None]


# ---------------------------------------------------------------------------
# Pure-JAX reference (same math, same bf16 cast of the streamed operands)
# ---------------------------------------------------------------------------
def sigmanet_reference(x_real, x_imag, params, l_real, l_imag, activation=True):
    hi = jax.lax.Precision.HIGHEST
    lr = l_real.astype(jnp.bfloat16).astype(jnp.float32)
    li = l_imag.astype(jnp.bfloat16).astype(jnp.float32)
    r, i = x_real.astype(jnp.float32), x_imag.astype(jnp.float32)
    for (w, b) in params["chebs"]:
        rb = r.astype(jnp.bfloat16).astype(jnp.float32)
        ib = i.astype(jnp.bfloat16).astype(jnp.float32)
        t_rr = jnp.dot(lr, rb, precision=hi)
        t_ii = jnp.dot(li, ib, precision=hi)
        t_ir = jnp.dot(lr, ib, precision=hi)
        t_ri = jnp.dot(li, rb, precision=hi)
        out_rr = jnp.dot(r, w[0], precision=hi) + jnp.dot(t_rr, w[1], precision=hi)
        out_ii = jnp.dot(i, w[0], precision=hi) + jnp.dot(t_ii, w[1], precision=hi)
        out_ir = jnp.dot(i, w[0], precision=hi) + jnp.dot(t_ir, w[1], precision=hi)
        out_ri = jnp.dot(r, w[0], precision=hi) + jnp.dot(t_ri, w[1], precision=hi)
        out_real = out_rr - out_ii + b
        out_imag = out_ir + out_ri + b
        if activation:
            mask = (out_real >= 0).astype(out_real.dtype)
            out_real = mask * out_real
            out_imag = mask * out_imag
        r, i = out_real, out_imag
    x = jnp.concatenate([r, i], axis=-1)
    logits = jnp.dot(x, params["wc"], precision=hi) + params["bc"]
    return jax.nn.log_softmax(logits, axis=-1).T[None]


# ---------------------------------------------------------------------------
# Glue: dense propagation matrix, parameter init
# ---------------------------------------------------------------------------
def build_dense_prop(edge_index, norm, n):
    # MessagePassing aggr='add': out[dst] += norm[e] * x[src]  =>  L[dst, src].
    l = jnp.zeros((n, n), jnp.float32)
    return l.at[edge_index[1], edge_index[0]].add(norm)


def glorot(key, shape):
    a = jnp.sqrt(6.0 / (shape[-2] + shape[-1]))
    return jax.random.uniform(key, shape, jnp.float32, -a, a)


def init_params(key, num_features, hidden, label_dim, layer, k_order):
    keys = jax.random.split(key, layer + 2)
    chebs = []
    f_in = num_features
    for l in range(layer):
        w = glorot(keys[l], (k_order + 1, f_in, hidden))
        b = jnp.zeros((hidden,), jnp.float32)
        chebs.append((w, b))
        f_in = hidden
    # Conv1d(2*hidden -> label_dim, kernel_size=1) stored as (2*hidden, label_dim).
    wc = glorot(keys[layer], (2 * hidden, label_dim))
    bc = (jax.random.uniform(keys[layer + 1], (label_dim,), jnp.float32) - 0.5) * 0.1
    return {"chebs": chebs, "wc": wc, "bc": bc}


if __name__ == "__main__":
    key = jax.random.PRNGKey(0)
    ks = jax.random.split(key, 8)

    N = 300           # nodes (padded to 384 -> 2 row tiles x 1 full-K step)
    num_features = 8
    hidden = 16
    label_dim = 4
    K = 1
    layer = 2
    E = 900           # directed edges

    src = jax.random.randint(ks[0], (E,), 0, N)
    dst = jax.random.randint(ks[1], (E,), 0, N)
    edge_index = jnp.stack([src, dst])                       # (2, E)
    norm_real = jax.random.normal(ks[2], (E,), jnp.float32) * 0.1
    norm_imag = jax.random.normal(ks[3], (E,), jnp.float32) * 0.1

    x_real = jax.random.normal(ks[4], (N, num_features), jnp.float32)
    x_imag = jax.random.normal(ks[5], (N, num_features), jnp.float32)

    l_real = build_dense_prop(edge_index, norm_real, N)
    l_imag = build_dense_prop(edge_index, norm_imag, N)

    params = init_params(ks[6], num_features, hidden, label_dim, layer, K)

    ref = sigmanet_reference(x_real, x_imag, params, l_real, l_imag,
                             activation=True)

    # 1) Default tiling (single full-K step, 2 "parallel" row tiles).
    out = sigmanet_forward(x_real, x_imag, params, l_real, l_imag,
                           activation=True)
    out = jax.block_until_ready(out)

    assert out.shape == (1, label_dim, N)
    assert bool(jnp.all(jnp.isfinite(out)))
    # log_softmax sanity: class probabilities sum to 1 per node.
    assert bool(jnp.allclose(jnp.sum(jnp.exp(out), axis=1), 1.0, atol=1e-4))
    max_err = float(jnp.max(jnp.abs(out - ref)))
    assert max_err < 0.1, f"kernel vs reference mismatch (full-K path): {max_err}"

    # 2) Forced multi-K tiling exercises the f32 accumulator path.
    out2 = sigmanet_forward(x_real, x_imag, params, l_real, l_imag,
                            activation=True, tiles=(384, 128, 256))
    out2 = jax.block_until_ready(out2)
    max_err2 = float(jnp.max(jnp.abs(out2 - ref)))
    assert max_err2 < 0.1, f"kernel vs reference mismatch (multi-K path): {max_err2}"

    print("KERNEL_OK")
</pallas_src>

<mosaic_0001>
module attributes {stable_mosaic.version = 11 : i64} {
  func.func @kernel(%arg0: i32, %arg1: i32, %arg2: memref<192x768xbf16, #tpu.memory_space<vmem>>, %arg3: memref<768x16xbf16, #tpu.memory_space<vmem>>, %arg4: memref<192x16xf32, #tpu.memory_space<vmem>>, %arg5: memref<16x32xf32, #tpu.memory_space<vmem>>, %arg6: memref<16x32xf32, #tpu.memory_space<vmem>>, %arg7: memref<1x32xf32, #tpu.memory_space<vmem>>, %arg8: memref<192x32xf32, #tpu.memory_space<vmem>>) attributes {dimension_semantics = [#tpu.dimension_semantics<parallel>, #tpu.dimension_semantics<arbitrary>], iteration_bounds = array<i64: 2, 1>, scalar_prefetch = 0 : i64, scratch_operands = 0 : i64, tpu.core_type = #tpu.core_type<tc>, window_params = [{transform_indices = @transform_0, window_bounds = array<i64: 192, 768>}, {pipeline_mode = #tpu.pipeline_mode<synchronous>, transform_indices = @transform_1, window_bounds = array<i64: 768, 16>}, {transform_indices = @transform_2, window_bounds = array<i64: 192, 16>}, {pipeline_mode = #tpu.pipeline_mode<synchronous>, transform_indices = @transform_3, window_bounds = array<i64: 16, 32>}, {pipeline_mode = #tpu.pipeline_mode<synchronous>, transform_indices = @transform_4, window_bounds = array<i64: 16, 32>}, {pipeline_mode = #tpu.pipeline_mode<synchronous>, transform_indices = @transform_5, window_bounds = array<i64: 1, 32>}, {transform_indices = @transform_6, window_bounds = array<i64: 192, 32>}]} {
    %c0 = arith.constant 0 : index
    %c0_0 = arith.constant 0 : index
    %0 = vector.load %arg3[%c0, %c0_0] : memref<768x16xbf16, #tpu.memory_space<vmem>>, vector<768x16xbf16>
    %c0_1 = arith.constant 0 : index
    %c0_2 = arith.constant 0 : index
    %1 = vector.load %arg2[%c0_1, %c0_2] : memref<192x768xbf16, #tpu.memory_space<vmem>>, vector<192x768xbf16>
    %cst = arith.constant dense<0.000000e+00> : vector<192x16xf32>
    %2 = tpu.matmul %1, %0, %cst {dimension_numbers = #tpu.dot_dimension_numbers<[1], [0], [0], [1], [0, 0, 1, 1], [], []>} : vector<192x768xbf16>, vector<768x16xbf16>, vector<192x16xf32> -> vector<192x16xf32>
    %c0_3 = arith.constant 0 : index
    %c0_4 = arith.constant 0 : index
    %3 = vector.load %arg4[%c0_3, %c0_4] : memref<192x16xf32, #tpu.memory_space<vmem>>, vector<192x16xf32>
    %c0_5 = arith.constant 0 : index
    %c0_6 = arith.constant 0 : index
    %4 = vector.load %arg5[%c0_5, %c0_6] : memref<16x32xf32, #tpu.memory_space<vmem>>, vector<16x32xf32>
    %cst_7 = arith.constant dense<0.000000e+00> : vector<192x32xf32>
    %5 = tpu.matmul %3, %4, %cst_7 {dimension_numbers = #tpu.dot_dimension_numbers<[1], [0], [0], [1], [0, 0, 1, 1], [], []>} : vector<192x16xf32>, vector<16x32xf32>, vector<192x32xf32> -> vector<192x32xf32>
    %c0_8 = arith.constant 0 : index
    %c0_9 = arith.constant 0 : index
    %6 = vector.load %arg6[%c0_8, %c0_9] : memref<16x32xf32, #tpu.memory_space<vmem>>, vector<16x32xf32>
    %cst_10 = arith.constant dense<0.000000e+00> : vector<192x32xf32>
    %7 = tpu.matmul %2, %6, %cst_10 {dimension_numbers = #tpu.dot_dimension_numbers<[1], [0], [0], [1], [0, 0, 1, 1], [], []>} : vector<192x16xf32>, vector<16x32xf32>, vector<192x32xf32> -> vector<192x32xf32>
    %8 = arith.addf %5, %7 : vector<192x32xf32>
    %c0_11 = arith.constant 0 : index
    %c0_12 = arith.constant 0 : index
    %9 = vector.load %arg7[%c0_11, %c0_12] : memref<1x32xf32, #tpu.memory_space<vmem>>, vector<1x32xf32>
    %10 = vector.broadcast %9 : vector<1x32xf32> to vector<192x32xf32>
    %11 = arith.addf %8, %10 : vector<192x32xf32>
    %12 = vector.extract_strided_slice %11 {offsets = [0, 0], sizes = [192, 16], strides = [1, 1]} : vector<192x32xf32> to vector<192x16xf32>
    %13 = vector.extract_strided_slice %11 {offsets = [0, 16], sizes = [192, 16], strides = [1, 1]} : vector<192x32xf32> to vector<192x16xf32>
    %cst_13 = arith.constant 0.000000e+00 : f32
    %14 = vector.broadcast %cst_13 : f32 to vector<192x16xf32>
    %15 = arith.cmpf oge, %12, %14 : vector<192x16xf32>
    %16 = arith.extui %15 : vector<192x16xi1> to vector<192x16xi32>
    %17 = arith.sitofp %16 : vector<192x16xi32> to vector<192x16xf32>
    %18 = arith.mulf %17, %12 : vector<192x16xf32>
    %19 = arith.mulf %17, %13 : vector<192x16xf32>
    %20 = tpu.concatenate %18, %19 in 1 : vector<192x16xf32>, vector<192x16xf32> -> vector<192x32xf32>
    %c0_14 = arith.constant 0 : index
    %c0_15 = arith.constant 0 : index
    %21 = vector.load %arg8[%c0_14, %c0_15] : memref<192x32xf32, #tpu.memory_space<vmem>>, vector<192x32xf32>
    tpu.vector_store %arg8[%c0_14, %c0_15], %20 {strides = array<i32>} : memref<192x32xf32, #tpu.memory_space<vmem>>, vector<192x32xf32>,
    return
  }
  func.func @transform_0(%arg0: i32, %arg1: i32) -> (i32, i32) {
    %c0_i32 = arith.constant 0 : i32
    return %arg0, %arg1 : i32, i32
  }
  func.func @transform_1(%arg0: i32, %arg1: i32) -> (i32, i32) {
    %c0_i32 = arith.constant 0 : i32
    %c0_i32_0 = arith.constant 0 : i32
    %c0_i32_1 = arith.constant 0 : i32
    return %c0_i32, %c0_i32_0 : i32, i32
  }
  func.func @transform_2(%arg0: i32, %arg1: i32) -> (i32, i32) {
    %c0_i32 = arith.constant 0 : i32
    %c0_i32_0 = arith.constant 0 : i32
    return %arg0, %c0_i32 : i32, i32
  }
  func.func @transform_3(%arg0: i32, %arg1: i32) -> (i32, i32) {
    %c0_i32 = arith.constant 0 : i32
    %c0_i32_0 = arith.constant 0 : i32
    %c0_i32_1 = arith.constant 0 : i32
    return %c0_i32, %c0_i32_0 : i32, i32
  }
  func.func @transform_4(%arg0: i32, %arg1: i32) -> (i32, i32) {
    %c0_i32 = arith.constant 0 : i32
    %c0_i32_0 = arith.constant 0 : i32
    %c0_i32_1 = arith.constant 0 : i32
    return %c0_i32, %c0_i32_0 : i32, i32
  }
  func.func @transform_5(%arg0: i32, %arg1: i32) -> (i32, i32) {
    %c0_i32 = arith.constant 0 : i32
    %c0_i32_0 = arith.constant 0 : i32
    %c0_i32_1 = arith.constant 0 : i32
    return %c0_i32, %c0_i32_0 : i32, i32
  }
  func.func @transform_6(%arg0: i32, %arg1: i32) -> (i32, i32) {
    %c0_i32 = arith.constant 0 : i32
    %c0_i32_0 = arith.constant 0 : i32
    return %arg0, %c0_i32 : i32, i32
  }
}

</mosaic_0001>

<bundles_post_ra>
// kernel: tpu_custom_call.1
= control target key start
LH: loop header
LB: loop body
LE: loop exit
PB: predicated region body
PF: predicated region fallthrough
CT: control target
= control target key end

     0   :  { %11 = vsyncpa [#allocation3], 0  ;;  %s4482_s0 = inlined_call_operand.hbm [shape: bf16[384,768], index: 0, kind: input, shape index: {}]   ;;  %s4483_s1 = inlined_call_operand.vmem [shape: bf16[768,16], index: 1, kind: input, shape index: {}]   ;;  %s4484_s2 = inlined_call_operand.vmem [shape: f32[384,16], index: 2, kind: input, shape index: {}]   ;;  %s4485_s3 = inlined_call_operand.vmem [shape: f32[16,32], index: 3, kind: input, shape index: {}]   ;;  %s4486_s4 = inlined_call_operand.vmem [shape: f32[16,32], index: 4, kind: input, shape index: {}]   ;;  %s4487_s5 = inlined_call_operand.vmem [shape: f32[1,32], index: 5, kind: input, shape index: {}]   ;;  %s4488_s6 = inlined_call_operand.vmem [shape: f32[384,32], index: 6, kind: output, shape index: {}]  }
   0x1   :  { %13 = vsyncpa [#allocation3 + $0x1], 0  ;;  %s3481_s21 = smov 0   ;;  %s3483_s22 = smov 0  }
   0x2   :  { %s3485_s23 = smov 0   ;;  %s3487_s24 = smov 0  }
   0x3   :  { %s3489_s25 = smov 0   ;;  %s3491_s26 = smov 0  }
   0x4 LB: > { %s2541_s27 = sadd.s32 4294967295, %s3438_s26   ;;  %s31_s28 = sadd.s32 1, %s3434_s25  ;;  %s3438_s26 = sphi %s3491_s26, %s19_s26   ;;  %s3434_s25 = sphi %s3489_s25, %s4495_s25   ;;  %s3430_s24 = sphi %s3487_s24, %s4494_s24   ;;  %s3426_s23 = sphi %s3485_s23, %s4493_s23   ;;  %s3422_s22 = sphi %s3483_s22, %s4492_s22   ;;  %s3418_s21 = sphi %s3481_s21, %s4491_s21  }
   0x5   : > { %p33_p0 = scmp.ge.s32.totalorder %s31_s28, 2  ;;  %s40_s29 = sadd.s32 1, %s3426_s23 }
   0x6   : > { %p47_p1 = scmp.ne.s32.totalorder %s3426_s23, %s3422_s22  ;;  %p48_p2 = scmp.eq.s32.totalorder %s3438_s26, 0 }
   0x7   : > { %s4497_s28 = smov (%p33_p0, %s31_s28), 0  ;;  %p53_p4 = scmp.ne.s32.totalorder %s3422_s22, %s3418_s21 }
   0x8   : > { %p49_p3 = por %p48_p2, %p47_p1  ;;  %s35_s30 = ssub.s32 %s3434_s25, %s4497_s28 }
   0x9   : > { %p54_p5 = scmp.eq.s32.totalorder %s2541_s27, 0  ;;  %p38_p6 = scmp.eq.s32.totalorder %s35_s30, 0 }
   0xa   : > { %p3149_p8 = scmp.lt.s32.totalorder %s3438_s26, 2  ;;  %s225_s9 = sand.u32 1, %s3426_s23  }
   0xb   : > { %p3520_p7 = por %p54_p5, %p53_p4  ;;  %s3140_s10 = smul.u32 576, %s225_s9 }
   0xc   : > { %s3526_s8 = scalar_select %p38_p6, %s3426_s23, %s40_s29  }
   0xd   : > { %s3150_s11 = smul.u32 9216, %s3434_s25  ;;  %p3530_p9 = pnand %p3149_p8, %p49_p3 }
   0xe   : > { %s229_s16 = scalar_lea.vmem [#allocation2], %s3140_s10  ;;  %p2546_p10 = scmp.ge.s32.totalorder %s3438_s26, 1 }
   0xf   : > { %s238_s15 = scalar_lea.hbm %s4482_s0, %s3150_s11  ;;  %s239_s17 = sshll.u32 %s229_s16, 4  ;;  %s240_s17 = int_to_ptr.vmem [resolvable:$true] %s239_s17 }
  0x10   : > { %s226_s18 = scalar_lea.sflag [#allocation3], %s225_s9  ;;  %p3362_p11 = pneg %p3530_p9 }
  0x11   : > { %s3373_s19 = scalar_lea.vmem %s240_s17, 9216  ;;  %s3440_s20 = smov [#allocation2]  }
  0x12   : > { %p3374_p12 = scmp.ne.s32.totalorder %s240_s17, %s3373_s19  ;;  %s3378_s21 = sshll.u32 %s3440_s20, 4  ;;  %s3379_s21 = int_to_ptr.vmem [resolvable:$false] %s3378_s21 }
  0x13   : > { %s3380_s27 = scalar_lea.vmem %s3379_s21, 18432  ;;  %p3381_p1 = scmp.lt.s32.totalorder %s240_s17, %s3379_s21 }
  0x14   : > { %p3376_p13 = pnand %p3374_p12, %p3362_p11  ;;  %p3382_p2 = scmp.lt.s32.totalorder %s3380_s27, %s3373_s19 }
  0x16   : > { %p3377_p0 = pneg %p3376_p13  ;;  %p3383_p3 = por %p3382_p2, %p3381_p1 }
  0x18   : > { %p3384_p4 = pnand %p3383_p3, %p3377_p0 }
  0x1a   : > { %3387 = shalt.err (!%p3384_p4)
}
  0x1b   : > { %s3441_s29 = smov 384   ;;  %s3442_s30 = smov 24  }
  0x1c   : > { %3148 = dma.hbm_to_vmem [thread:$0]  (!%p3530_p9), %s238_s15, 9216, %s240_s17, %s226_s18, %s3441_s29, %s3441_s29, %s3442_s30  }
  0x1d   : > { %p256_p5 = scmp.lt.s32.totalorder %s3438_s26, 3 }
  0x1f   : > { %p257_p6 = pnand %p2546_p10, %p256_p5 }
  0x20   : > { %s262_s9 = sand.u32 (!%p257_p6), 1, %s3422_s22  }
  0x21   : > { %260 = sbr.rel (%p257_p6) target bundleno = 943 (0x3af), region = 44  ;;  %s263_s11 = scalar_lea.sflag (!%p257_p6), [#allocation3], %s262_s9 }
  0x22   : > { %s3142_s10 = smul.u32 (!%p257_p6), 576, %s262_s9 }
  0x24   : > { %s3546_s13 = scalar_lea.vmem (!%p257_p6), [#allocation2], %s3142_s10 }
  0x26   : > { %3413 = dma.done.wait (%p3520_p7), %s263_s11, 9216  }
  0x27   : > { %3415 = vsyncadd (%p3520_p7), %s263_s11, 4294958080  ;;  %v3204_v0 = vld [vmem:[%s4483_s1 + $0x78] sm:$0xff]   ;;  %v3208_v4 = vld [vmem:[%s4483_s1 + $0x70] sm:$0xff]   ;;  %vm1546_vm0 = vcmask 130048   ;;  %s302_s20 = smul.u32 24, %s3430_s24  ;;  %s3443_s9 = smov 112  }
  0x28   : > { %v3205_v1 = vld [vmem:[%s4483_s1 + $0xf8] sm:$0xff]   ;;  %2744 = vmatprep.subr.bf16.mxu0 %v3204_v0  ;;  %v3209_v5 = vld [vmem:[%s4483_s1 + $0xf0] sm:$0xff]   ;;  %v3212_v8 = vld [vmem:[%s4483_s1 + $0x68] sm:$0xff]   ;;  %s3445_s10 = smov 16  }
  0x29   : > { %v3206_v2 = vld [vmem:[%s4483_s1 + $0x38] sm:$0xff]   ;;  %2832 = vmatprep.subr.bf16.mxu1 %v3205_v1  ;;  %v3210_v6 = vld [vmem:[%s4483_s1 + $0x30] sm:$0xff]   ;;  %v3213_v9 = vld [vmem:[%s4483_s1 + $0xe8] sm:$0xff]   ;;  %p303_p7 = scmp.lt.s32.totalorder %s302_s20, 47 }
  0x2a   : > { %v3207_v3 = vld [vmem:[%s4483_s1 + $0xb8] sm:$0xff]   ;;  %2745 = vmatpush3.bf16.msra.mxu0 %v3206_v2  ;;  %v3211_v7 = vld [vmem:[%s4483_s1 + $0xb0] sm:$0xff]   ;;  %v3214_v10 = vld [vmem:[%s4483_s1 + $0x28] sm:$0xff]  }
  0x2b   : > { %2833 = vmatpush3.bf16.msra.mxu1 %v3207_v3  ;;  %2746 = vmatprep.subr.bf16.mxu0 %v3208_v4  ;;  %v3215_v11 = vld [vmem:[%s4483_s1 + $0xa8] sm:$0xff]   ;;  %v3216_v12 = vld [vmem:[%s4483_s1 + $0x60] sm:$0xff]   ;;  %v3220_v16 = vld [vmem:[%s4483_s1 + $0x58] sm:$0xff]   ;;  %s4499_s20 = smov (!%p303_p7, %s302_s20), 47 }
  0x2c   : > { %2834 = vmatprep.subr.bf16.mxu1 %v3209_v5  ;;  %v3217_v13 = vld [vmem:[%s4483_s1 + $0xe0] sm:$0xff]   ;;  %v3221_v17 = vld [vmem:[%s4483_s1 + $0xd8] sm:$0xff]   ;;  %v3224_v20 = vld [vmem:[%s4483_s1 + $0x50] sm:$0xff]   ;;  %s2547_s24 = sshll.u32 %s4499_s20, 3 }
  0x2d   : > { %v3218_v14 = vld [vmem:[%s4483_s1 + $0x20] sm:$0xff]   ;;  %v3222_v18 = vld [vmem:[%s4483_s1 + $0x18] sm:$0xff]   ;;  %v3225_v21 = vld [vmem:[%s4483_s1 + $0xd0] sm:$0xff]   ;;  %s3985_s27 = scalar_lea.vmem %s4484_s2, %s2547_s24  ;;  %s4342_s16 = scalar_lea.vmem %s4488_s6, %s2547_s24 }
  0x2e   : > { %2747 = vmatpush3.bf16.msra.mxu0 %v3210_v6  ;;  %v3219_v15 = vld [vmem:[%s4483_s1 + $0xa0] sm:$0xff]   ;;  %v3223_v19 = vld [vmem:[%s4483_s1 + $0x98] sm:$0xff]   ;;  %v3226_v22 = vld [vmem:[%s4483_s1 + $0x10] sm:$0xff]  }
  0x2f   : > { %2835 = vmatpush3.bf16.msra.mxu1 %v3211_v7  ;;  %2748 = vmatprep.subr.bf16.mxu0 %v3212_v8  ;;  %v3227_v23 = vld [vmem:[%s4483_s1 + $0x90] sm:$0xff]   ;;  %v3228_v24 = vld [vmem:[%s4483_s1 + $0x48] sm:$0xff]   ;;  %v3232_v28 = vld [vmem:[%s4483_s1 + $0x40] sm:$0xff]  }
  0x30   : > { %2836 = vmatprep.subr.bf16.mxu1 %v3213_v9  ;;  %v3229_v25 = vld [vmem:[%s4483_s1 + $0xc8] sm:$0xff]   ;;  %v3233_v29 = vld [vmem:[%s4483_s1 + $0xc0] sm:$0xff]   ;;  %v3242_v36 = vld [vmem:[%s4483_s1 + $0x178] sm:$0xff]  }
  0x31   : > { %v3230_v26 = vld [vmem:[%s4483_s1 + $0x8] sm:$0xff]   ;;  %v3234_v30 = vld [vmem:[%s4483_s1] sm:$0xff]   ;;  %v3243_v37 = vld [vmem:[%s4483_s1 + $0x138] sm:$0xff]  }
  0x32   : > { %2749 = vmatpush3.bf16.msra.mxu0 %v3214_v10  ;;  %v3231_v27 = vld [vmem:[%s4483_s1 + $0x88] sm:$0xff]   ;;  %v3235_v31 = vld [vmem:[%s4483_s1 + $0x80] sm:$0xff]   ;;  %v3246_v39 = vld [vmem:[%s3546_s13 + $0x3c] ss:$24 sps:$4 sm:$0xff]  }
  0x33   : > { %2837 = vmatpush3.bf16.msra.mxu1 %v3215_v11  ;;  %2750 = vmatprep.subr.bf16.mxu0 %v3216_v12  ;;  %v3236_v32 = vld [vmem:[%s3546_s13] ss:$24 sps:$4 sm:$0xff]   ;;  %v3238_v33 = vld [vmem:[%s3546_s13 + $0x4] ss:$24 sps:$4 sm:$0xff]   ;;  %v3244_v38 = vld [vmem:[%s3546_s13 + $0x34] ss:$24 sps:$4 sm:$0xff]  }
  0x34   : > { %2838 = vmatprep.subr.bf16.mxu1 %v3217_v13  ;;  %v3239_v34 = vld [vmem:[%s3546_s13 + $0x8] ss:$24 sps:$4 sm:$0xff]   ;;  %v3241_v35 = vld [vmem:[%s3546_s13 + $0xc] ss:$24 sps:$4 sm:$0xff]   ;;  %1163 = vmatprep.mubr.bf16.mxu0 %v3238_v33  ;;  %v3249_v41 = vld [vmem:[%s3546_s13 + $0x38] ss:$24 sps:$4 sm:$0xff]  }
  0x35   : > { %1292 = vmatprep.mubr.bf16.mxu1 %v3241_v35  ;;  %v3248_v40 = vld [vmem:[%s3546_s13 + $0x30] ss:$24 sps:$4 sm:$0xff]   ;;  %v3252_v44 = vld [vmem:[%s3546_s13 + $0x64] ss:$24 sps:$4 sm:$0xff]   ;;  %v3256_v46 = vld [vmem:[%s3546_s13 + $0x60] ss:$24 sps:$4 sm:$0xff]  }
  0x36   : > { %2751 = vmatpush3.bf16.msra.mxu0 %v3218_v14  ;;  %v3250_v42 = vld [vmem:[%s4483_s1 + $0x170] sm:$0xff]   ;;  %v3254_v45 = vld [vmem:[%s3546_s13 + $0x6c] ss:$24 sps:$4 sm:$0xff]   ;;  %v3257_v47 = vld [vmem:[%s3546_s13 + $0x68] ss:$24 sps:$4 sm:$0xff]  }
  0x37   : > { %2839 = vmatpush3.bf16.msra.mxu1 %v3219_v15  ;;  %2752 = vmatprep.subr.bf16.mxu0 %v3220_v16  ;;  %v3251_v43 = vld [vmem:[%s4483_s1 + $0x130] sm:$0xff]   ;;  %v3264_v48 = vld [vmem:[%s4483_s1 + $0x168] sm:$0xff]   ;;  %v3272_v52 = vld [vmem:[%s4483_s1 + $0x160] sm:$0xff]  }
  0x38   : > { %2840 = vmatprep.subr.bf16.mxu1 %v3221_v17  ;;  %v3265_v49 = vld [vmem:[%s4483_s1 + $0x128] sm:$0xff]   ;;  %v3260_v51 = vld [vmem:[%s3546_s13 + $0x9c] ss:$24 sps:$4 sm:$0xff]   ;;  %v3273_v53 = vld [vmem:[%s4483_s1 + $0x120] sm:$0xff]  }
  0x39   : > { %v3258_v50 = vld [vmem:[%s3546_s13 + $0x94] ss:$24 sps:$4 sm:$0xff]   ;;  %v3262_v54 = vld [vmem:[%s3546_s13 + $0x90] ss:$24 sps:$4 sm:$0xff]   ;;  %v3266_v56 = vld [vmem:[%s3546_s13 + $0xc4] ss:$24 sps:$4 sm:$0xff]  }
  0x3a   : > { %2753 = vmatpush3.bf16.msra.mxu0 %v3222_v18  ;;  %v3263_v55 = vld [vmem:[%s3546_s13 + $0x98] ss:$24 sps:$4 sm:$0xff]   ;;  %v3268_v57 = vld [vmem:[%s3546_s13 + $0xcc] ss:$24 sps:$4 sm:$0xff]   ;;  %v3271_v61 = vld [vmem:[%s3546_s13 + $0xc8] ss:$24 sps:$4 sm:$0xff]  }
  0x3b   : > { %2841 = vmatpush3.bf16.msra.mxu1 %v3223_v19  ;;  %2754 = vmatprep.subr.bf16.mxu0 %v3224_v20  ;;  %v3286_v58 = vld [vmem:[%s4483_s1 + $0x158] sm:$0xff]   ;;  %v3274_v62 = vld [vmem:[%s3546_s13 + $0xf4] ss:$24 sps:$4 sm:$0xff]   ;;  %v3278_v2 = vld [vmem:[%s3546_s13 + $0xf0] ss:$24 sps:$4 sm:$0xff]  }
  0x3c   : > { %2842 = vmatprep.subr.bf16.mxu1 %v3225_v21  ;;  %v3287_v59 = vld [vmem:[%s4483_s1 + $0x118] sm:$0xff]   ;;  %v3294_v63 = vld [vmem:[%s4483_s1 + $0x150] sm:$0xff]   ;;  %v3308_v4 = vld [vmem:[%s4483_s1 + $0x148] sm:$0xff]  }
  0x3d   : > { %v3270_v60 = vld [vmem:[%s3546_s13 + $0xc0] ss:$24 sps:$4 sm:$0xff]   ;;  %v3295_v0 = vld [vmem:[%s4483_s1 + $0x110] sm:$0xff]   ;;  %v3309_v5 = vld [vmem:[%s4483_s1 + $0x108] sm:$0xff]  }
  0x3e   : > { %2755 = vmatpush3.bf16.msra.mxu0 %v3226_v22  ;;  %v3276_v1 = vld [vmem:[%s3546_s13 + $0xfc] ss:$24 sps:$4 sm:$0xff]   ;;  %v3279_v3 = vld [vmem:[%s3546_s13 + $0xf8] ss:$24 sps:$4 sm:$0xff]   ;;  %v3282_v7 = vld [vmem:[%s3546_s13 + $0x12c] ss:$24 sps:$4 sm:$0xff]  }
  0x3f   : > { %2843 = vmatpush3.bf16.msra.mxu1 %v3227_v23  ;;  %2756 = vmatprep.subr.bf16.mxu0 %v3228_v24  ;;  %v3280_v6 = vld [vmem:[%s3546_s13 + $0x124] ss:$24 sps:$4 sm:$0xff]   ;;  %v3284_v10 = vld [vmem:[%s3546_s13 + $0x120] ss:$24 sps:$4 sm:$0xff]   ;;  %v3288_v12 = vld [vmem:[%s3546_s13 + $0x154] ss:$24 sps:$4 sm:$0xff]  }
  0x40   : > { %2844 = vmatprep.subr.bf16.mxu1 %v3229_v25  ;;  %v3316_v8 = vld [vmem:[%s4483_s1 + $0x140] sm:$0xff]   ;;  %v3290_v13 = vld [vmem:[%s3546_s13 + $0x15c] ss:$24 sps:$4 sm:$0xff]   ;;  %v3292_v14 = vld [vmem:[%s3546_s13 + $0x150] ss:$24 sps:$4 sm:$0xff]  }
  0x41   : > { %v3317_v9 = vld [vmem:[%s4483_s1 + $0x100] sm:$0xff]   ;;  %v3293_v15 = vld [vmem:[%s3546_s13 + $0x158] ss:$24 sps:$4 sm:$0xff]   ;;  %v3302_v20 = vld [vmem:[%s3546_s13 + $0x1b4] ss:$24 sps:$4 sm:$0xff]  }
  0x42   : > { %2757 = vmatpush3.bf16.msra.mxu0 %v3230_v26  ;;  %v3285_v11 = vld [vmem:[%s3546_s13 + $0x128] ss:$24 sps:$4 sm:$0xff]   ;;  %v3296_v16 = vld [vmem:[%s3546_s13 + $0x184] ss:$24 sps:$4 sm:$0xff]   ;;  %v3307_v23 = vld [vmem:[%s3546_s13 + $0x1b8] ss:$24 sps:$4 sm:$0xff]  }
  0x43   : > { %2845 = vmatpush3.bf16.msra.mxu1 %v3231_v27  ;;  %2758 = vmatprep.subr.bf16.mxu0 %v3232_v28  ;;  %v3298_v17 = vld [vmem:[%s3546_s13 + $0x18c] ss:$24 sps:$4 sm:$0xff]   ;;  %v3300_v18 = vld [vmem:[%s3546_s13 + $0x180] ss:$24 sps:$4 sm:$0xff]   ;;  %v3304_v21 = vld [vmem:[%s3546_s13 + $0x1bc] ss:$24 sps:$4 sm:$0xff]  }
  0x44   : > { %2846 = vmatprep.subr.bf16.mxu1 %v3233_v29  ;;  %v3301_v19 = vld [vmem:[%s3546_s13 + $0x188] ss:$24 sps:$4 sm:$0xff]   ;;  %v3310_v24 = vld [vmem:[%s3546_s13 + $0x1e4] ss:$24 sps:$4 sm:$0xff]   ;;  %v3318_v28 = vld [vmem:[%s3546_s13 + $0x214] ss:$24 sps:$4 sm:$0xff]  }
  0x45   : > { %v3306_v22 = vld [vmem:[%s3546_s13 + $0x1b0] ss:$24 sps:$4 sm:$0xff]   ;;  %v3312_v25 = vld [vmem:[%s3546_s13 + $0x1ec] ss:$24 sps:$4 sm:$0xff]   ;;  %v3314_v26 = vld [vmem:[%s3546_s13 + $0x1e0] ss:$24 sps:$4 sm:$0xff]  }
  0x46   : > { %2759 = vmatpush3.bf16.msra.mxu0 %v3234_v30  ;;  %v3315_v27 = vld [vmem:[%s3546_s13 + $0x1e8] ss:$24 sps:$4 sm:$0xff]   ;;  %v3320_v29 = vld [vmem:[%s3546_s13 + $0x21c] ss:$24 sps:$4 sm:$0xff]  }
  0x47   : > { %2847 = vmatpush3.bf16.msra.mxu1 %v3235_v31  ;;  %2920 = vmatprep.subr.bf16.mxu0 %v3242_v36  ;;  %v3322_v30 = vld [vmem:[%s3546_s13 + $0x210] ss:$24 sps:$4 sm:$0xff]   ;;  %v3329_v35 = vld [vmem:[%s3546_s13 + $0x40] ss:$24 sps:$4 sm:$0xff]   ;;  %v3330_v36 = vld [vmem:[%s3546_s13 + $0x74] ss:$24 sps:$4 sm:$0xff]  }
  0x48   : > { %v3323_v31 = vld [vmem:[%s3546_s13 + $0x218] ss:$24 sps:$4 sm:$0xff]  }
  0x49   : > { %1164 = vmatmul.mubr.bf16.vlgmr.msra.gmra.mxu0 %v3236_v32  ;;  %v3326_v32 = vld [vmem:[%s3546_s13 + $0x14] ss:$24 sps:$4 sm:$0xff]   ;;  %v3324_v33 = vld [vmem:[%s3546_s13 + $0x10] ss:$24 sps:$4 sm:$0xff]  }
  0x4a   : > { %1293 = vmatmul.mubr.bf16.vlgmr.msra.gmra.mxu1 %v3239_v34  ;;  %2921 = vmatpush3.bf16.msra.mxu0 %v3243_v37  ;;  %v3327_v34 = vld [vmem:[%s3546_s13 + $0x44] ss:$24 sps:$4 sm:$0xff]   ;;  %v3332_v37 = vld [vmem:[%s3546_s13 + $0x70] ss:$24 sps:$4 sm:$0xff]  }
  0x4b   : > { %1171 = vmatprep.mubr.bf16.mxu0 %v3244_v38  ;;  %1300 = vmatprep.mubr.bf16.mxu1 %v3246_v39  ;;  %v3333_v38 = vld [vmem:[%s3546_s13 + $0xa4] ss:$24 sps:$4 sm:$0xff]   ;;  %v3335_v39 = vld [vmem:[%s3546_s13 + $0xa0] ss:$24 sps:$4 sm:$0xff]  }
  0x4c   : > { %2922 = vmatprep.subr.bf16.mxu0 %v3250_v42  ;;  %v3338_v42 = vld [vmem:[%s3546_s13 + $0xd0] ss:$24 sps:$4 sm:$0xff]  }
  0x4e   : > { %2923 = vmatpush3.bf16.msra.mxu0 %v3251_v43  ;;  %v3339_v43 = vld [vmem:[%s3546_s13 + $0x104] ss:$24 sps:$4 sm:$0xff]  }
  0x4f   : > { %2924 = vmatprep.subr.bf16.mxu0 %v3264_v48  ;;  %v3347_v48 = vld [vmem:[%s3546_s13 + $0x160] ss:$24 sps:$4 sm:$0xff]  }
  0x51   : > { %1172 = vmatmul.mubr.bf16.gmra.mxu0 %v3248_v40  ;;  %v3336_v40 = vld [vmem:[%s3546_s13 + $0xd4] ss:$24 sps:$4 sm:$0xff]  }
  0x52   : > { %1301 = vmatmul.mubr.bf16.gmra.mxu1 %v3249_v41  ;;  %1179 = vmatprep.mubr.bf16.mxu0 %v3252_v44  ;;  %v1545_v41 = vld [vmem:[%s4486_s4 + $0x8] sm:$0xff]  ;;  %v3341_v44 = vld [vmem:[%s3546_s13 + $0x100] ss:$24 sps:$4 sm:$0xff]  }
  0x53   : > { %1308 = vmatprep.mubr.bf16.mxu1 %v3254_v45  ;;  %2925 = vmatpush3.bf16.msra.mxu0 %v3265_v49  ;;  %v3342_v45 = vld [vmem:[%s3546_s13 + $0x134] ss:$24 sps:$4 sm:$0xff]  }
  0x54   : > { %2926 = vmatprep.subr.bf16.mxu0 %v3272_v52  ;;  %3060 = vmatprep.subr.mxu1 %v1545_v41  ;;  %v3348_v49 = vld [vmem:[%s3546_s13 + $0x194] ss:$24 sps:$4 sm:$0xff]   ;;  %v3353_v52 = vld [vmem:[%s3546_s13 + $0x1c0] ss:$24 sps:$4 sm:$0xff]  }
  0x55   : > { %3061 = vmatpush3.msra.mxu1 %v1545_v41 }
  0x57   : > { %2927 = vmatpush3.bf16.msra.mxu0 %v3273_v53  ;;  %v3354_v53 = vld [vmem:[%s3546_s13 + $0x1f4] ss:$24 sps:$4 sm:$0xff]  }
  0x58   : > { %2928 = vmatprep.subr.bf16.mxu0 %v3286_v58 }
  0x59   : > { %1180 = vmatmul.mubr.bf16.gmra.mxu0 %v3256_v46  ;;  %v3344_v46 = vld [vmem:[%s3546_s13 + $0x130] ss:$24 sps:$4 sm:$0xff]  }
  0x5a   : > { %1309 = vmatmul.mubr.bf16.gmra.mxu1 %v3257_v47  ;;  %1187 = vmatprep.mubr.bf16.mxu0 %v3258_v50  ;;  %v3345_v47 = vld [vmem:[%s3546_s13 + $0x164] ss:$24 sps:$4 sm:$0xff]   ;;  %v3350_v50 = vld [vmem:[%s3546_s13 + $0x190] ss:$24 sps:$4 sm:$0xff]  }
  0x5b   : > { %1316 = vmatprep.mubr.bf16.mxu1 %v3260_v51  ;;  %2929 = vmatpush3.bf16.msra.mxu0 %v3287_v59  ;;  %v3351_v51 = vld [vmem:[%s3546_s13 + $0x1c4] ss:$24 sps:$4 sm:$0xff]  }
  0x5c   : > { %2930 = vmatprep.subr.bf16.mxu0 %v3294_v63 }
  0x5f   : > { %2931 = vmatpush3.bf16.msra.mxu0 %v3295_v0 }
  0x60   : > { %2932 = vmatprep.subr.bf16.mxu0 %v3308_v4 }
  0x61   : > { %1188 = vmatmul.mubr.bf16.gmra.mxu0 %v3262_v54  ;;  %v1544_v54 = vld [vmem:[%s4486_s4] sm:$0xff] }
  0x62   : > { %1317 = vmatmul.mubr.bf16.gmra.mxu1 %v3263_v55  ;;  %1195 = vmatprep.mubr.bf16.mxu0 %v3266_v56  ;;  %v3356_v55 = vld [vmem:[%s3546_s13 + $0x1f0] ss:$24 sps:$4 sm:$0xff]   ;;  %v3357_v56 = vld [vmem:[%s3546_s13 + $0x224] ss:$24 sps:$4 sm:$0xff]  }
  0x63   : > { %1324 = vmatprep.mubr.bf16.mxu1 %v3268_v57  ;;  %2933 = vmatpush3.bf16.msra.mxu0 %v3309_v5  ;;  %v3359_v57 = vld [vmem:[%s3546_s13 + $0x220] ss:$24 sps:$4 sm:$0xff]  }
  0x64   : > { %2934 = vmatprep.subr.bf16.mxu0 %v3316_v8  ;;  %3062 = vmatprep.subr.mxu1 %v1544_v54 }
  0x65   : > { %3063 = vmatpush3.msra.mxu1 %v1544_v54 }
  0x67   : > { %2935 = vmatpush3.bf16.msra.mxu0 %v3317_v9 }
  0x69   : > { %1196 = vmatmul.mubr.bf16.gmra.mxu0 %v3270_v60 }
  0x6a   : > { %1325 = vmatmul.mubr.bf16.gmra.mxu1 %v3271_v61  ;;  %1203 = vmatprep.mubr.bf16.mxu0 %v3274_v62 }
  0x6b   : > { %1332 = vmatprep.mubr.bf16.mxu1 %v3276_v1 }
  0x71   : > { %1204 = vmatmul.mubr.bf16.gmra.mxu0 %v3278_v2 }
  0x72   : > { %1333 = vmatmul.mubr.bf16.gmra.mxu1 %v3279_v3  ;;  %1211 = vmatprep.mubr.bf16.mxu0 %v3280_v6 }
  0x73   : > { %1340 = vmatprep.mubr.bf16.mxu1 %v3282_v7 }
  0x79   : > { %1212 = vmatmul.mubr.bf16.gmra.mxu0 %v3284_v10 }
  0x7a   : > { %1341 = vmatmul.mubr.bf16.gmra.mxu1 %v3285_v11  ;;  %1219 = vmatprep.mubr.bf16.mxu0 %v3288_v12 }
  0x7b   : > { %1348 = vmatprep.mubr.bf16.mxu1 %v3290_v13 }
  0x81   : > { %1220 = vmatmul.mubr.bf16.gmra.mxu0 %v3292_v14 }
  0x82   : > { %1349 = vmatmul.mubr.bf16.gmra.mxu1 %v3293_v15  ;;  %1227 = vmatprep.mubr.bf16.mxu0 %v3296_v16 }
  0x83   : > { %1356 = vmatprep.mubr.bf16.mxu1 %v3298_v17 }
  0x89   : > { %1228 = vmatmul.mubr.bf16.gmra.mxu0 %v3300_v18 }
  0x8a   : > { %1357 = vmatmul.mubr.bf16.gmra.mxu1 %v3301_v19  ;;  %1235 = vmatprep.mubr.bf16.mxu0 %v3302_v20 }
  0x8b   : > { %1364 = vmatprep.mubr.bf16.mxu1 %v3304_v21  ;;  %v3805_v21 = vld [vmem:[%s4485_s3 + $0x8] sm:$0xff] }
  0x8c   : > { %3100 = vmatprep.subr.mxu1 %v3805_v21 }
  0x91   : > { %1236 = vmatmul.mubr.bf16.gmra.mxu0 %v3306_v22 }
  0x92   : > { %1365 = vmatmul.mubr.bf16.gmra.mxu1 %v3307_v23  ;;  %1243 = vmatprep.mubr.bf16.mxu0 %v3310_v24 }
  0x93   : > { %1372 = vmatprep.mubr.bf16.mxu1 %v3312_v25 }
  0x99   : > { %1244 = vmatmul.mubr.bf16.gmra.mxu0 %v3314_v26 }
  0x9a   : > { %1373 = vmatmul.mubr.bf16.gmra.mxu1 %v3315_v27  ;;  %1251 = vmatprep.mubr.bf16.mxu0 %v3318_v28 }
  0x9b   : > { %1380 = vmatprep.mubr.bf16.mxu1 %v3320_v29 }
  0xa1   : > { %1252 = vmatmul.mubr.bf16.gmra.mxu0 %v3322_v30 }
  0xa2   : > { %1381 = vmatmul.mubr.bf16.gmra.mxu1 %v3323_v31  ;;  %1421 = vmatprep.mubr.bf16.mxu0 %v3326_v32 }
  0xa9   : > { %1422 = vmatmul.mubr.bf16.vlgmr.msra.gmra.mxu0 %v3324_v33 }
  0xaa   : > { %1429 = vmatprep.mubr.bf16.mxu0 %v3327_v34 }
  0xb1   : > { %1430 = vmatmul.mubr.bf16.gmra.mxu0 %v3329_v35 }
  0xb2   : > { %1437 = vmatprep.mubr.bf16.mxu0 %v3330_v36 }
  0xb9   : > { %1438 = vmatmul.mubr.bf16.gmra.mxu0 %v3332_v37 }
  0xba   : > { %1445 = vmatprep.mubr.bf16.mxu0 %v3333_v38 }
  0xc1   : > { %1446 = vmatmul.mubr.bf16.gmra.mxu0 %v3335_v39 }
  0xc2   : > { %1453 = vmatprep.mubr.bf16.mxu0 %v3336_v40 }
  0xc9   : > { %1454 = vmatmul.mubr.bf16.gmra.mxu0 %v3338_v42 }
  0xca   : > { %1461 = vmatprep.mubr.bf16.mxu0 %v3339_v43 }
  0xd1   : > { %1462 = vmatmul.mubr.bf16.gmra.mxu0 %v3341_v44 }
  0xd2   : > { %1469 = vmatprep.mubr.bf16.mxu0 %v3342_v45 }
  0xd9   : > { %1470 = vmatmul.mubr.bf16.gmra.mxu0 %v3344_v46 }
  0xda   : > { %1477 = vmatprep.mubr.bf16.mxu0 %v3345_v47 }
  0xe1   : > { %1478 = vmatmul.mubr.bf16.gmra.mxu0 %v3347_v48 }
  0xe2   : > { %1485 = vmatprep.mubr.bf16.mxu0 %v3348_v49 }
  0xe9   : > { %1486 = vmatmul.mubr.bf16.gmra.mxu0 %v3350_v50 }
  0xea   : > { %1493 = vmatprep.mubr.bf16.mxu0 %v3351_v51 }
  0xf1   : > { %1494 = vmatmul.mubr.bf16.gmra.mxu0 %v3353_v52 }
  0xf2   : > { %1501 = vmatprep.mubr.bf16.mxu0 %v3354_v53 }
  0xf9   : > { %1502 = vmatmul.mubr.bf16.gmra.mxu0 %v3356_v55 }
  0xfa   : > { %1509 = vmatprep.mubr.bf16.mxu0 %v3357_v56 }
 0x101   : > { %1510 = vmatmul.mubr.bf16.gmra.mxu0 %v3359_v57 }
 0x109   : > { %v2760_v58 = vpop.f32.mrf.mxu0 }
 0x10a   : > { %v3774_v59 = vpop.f32.mrf.mxu1 }
 0x10b   : > { %v2761_v60 = vpop.f32.mrf.mxu0 }
 0x10c   : > { %v3776_v61 = vadd.f32 %v2761_v60, %v2760_v58  ;;  %v3778_v62 = vpop.f32.mrf.mxu1 }
 0x10d   : > { %v2763_v63 = vpop.f32.mrf.mxu0 }
 0x10e   : > { %v3780_v0 = vpop.f32.mrf.mxu1 }
 0x10f   : > { %v2764_v1 = vpop.f32.mrf.mxu0 }
 0x110   : > { %v3782_v2 = vadd.f32 %v2764_v1, %v2763_v63  ;;  %v3784_v3 = vpop.f32.mrf.mxu1 }
 0x111   : > { %v2766_v4 = vpop.f32.mrf.mxu0 }
 0x112   : > { %v3788_v7 = vpop.f32.mrf.mxu1 }
 0x113   : > { %v2767_v5 = vpop.f32.mrf.mxu0 }
 0x114   : > { %v3786_v6 = vadd.f32 %v2767_v5, %v2766_v4  ;;  %v3792_v11 = vpop.f32.mrf.mxu1 }
 0x115   : > { %v2769_v8 = vpop.f32.mrf.mxu0 }
 0x116   : > { %v3796_v15 = vpop.f32.mrf.mxu1 }
 0x117   : > { %v2770_v9 = vpop.f32.mrf.mxu0 }
 0x118   : > { %v3790_v10 = vadd.f32 %v2770_v9, %v2769_v8  ;;  %v3800_v19 = vpop.f32.mrf.mxu1 }
 0x119   : > { %v2772_v12 = vpop.f32.mrf.mxu0 }
 0x11a   : > { %v3810_v24 = vpop.f32.mrf.mxu1 }
 0x11b   : > { %v2773_v13 = vpop.f32.mrf.mxu0 }
 0x11c   : > { %v3794_v14 = vadd.f32 %v2773_v13, %v2772_v12  ;;  %v3814_v28 = vpop.f32.mrf.mxu1 }
 0x11d   : > { %v2775_v16 = vpop.f32.mrf.mxu0 }
 0x11e   : > { %v3818_v32 = vpop.f32.mrf.mxu1 }
 0x11f   : > { %v2776_v17 = vpop.f32.mrf.mxu0 }
 0x120   : > { %v3798_v18 = vadd.f32 %v2776_v17, %v2775_v16  ;;  %v3822_v36 = vpop.f32.mrf.mxu1 }
 0x121   : > { %v2778_v20 = vpop.f32.mrf.mxu0 }
 0x122   : > { %v3826_v40 = vpop.f32.mrf.mxu1 }
 0x123   : > { %v2779_v22 = vpop.f32.mrf.mxu0 }
 0x124   : > { %v3808_v23 = vadd.f32 %v2779_v22, %v2778_v20  ;;  %v3830_v44 = vpop.f32.mrf.mxu1 }
 0x125   : > { %v2781_v25 = vpop.f32.mrf.mxu0 }
 0x126   : > { %v3834_v48 = vpop.f32.mrf.mxu1 }
 0x127   : > { %v2782_v26 = vpop.f32.mrf.mxu0 }
 0x128   : > { %v3812_v27 = vadd.f32 %v2782_v26, %v2781_v25  ;;  %v3838_v52 = vpop.f32.mrf.mxu1 }
 0x129   : > { %v2784_v29 = vpop.f32.mrf.mxu0 }
 0x12a   : > { %v3842_v56 = vpop.f32.mrf.mxu1 }
 0x12b   : > { %v2785_v30 = vpop.f32.mrf.mxu0 }
 0x12c   : > { %v3816_v31 = vadd.f32 %v2785_v30, %v2784_v29  ;;  %v3846_v63 = vpop.f32.mrf.mxu1 }
 0x12d   : > { %v2787_v33 = vpop.f32.mrf.mxu0 }
 0x12e   : > { %v3850_v8 = vpop.f32.mrf.mxu1 }
 0x12f   : > { %v2788_v34 = vpop.f32.mrf.mxu0 }
 0x130   : > { %v3820_v35 = vadd.f32 %v2788_v34, %v2787_v33  ;;  %v3854_v16 = vpop.f32.mrf.mxu1 }
 0x131   : > { %v2790_v37 = vpop.f32.mrf.mxu0 }
 0x132   : > { %v3858_v25 = vpop.f32.mrf.mxu1 }
 0x133   : > { %v2791_v38 = vpop.f32.mrf.mxu0 }
 0x134   : > { %v3824_v39 = vadd.f32 %v2791_v38, %v2790_v37  ;;  %v3862_v33 = vpop.f32.mrf.mxu1 }
 0x135   : > { %v2793_v41 = vpop.f32.mrf.mxu0 }
 0x137   : > { %v2794_v42 = vpop.f32.mrf.mxu0 }
 0x138   : > { %v3828_v43 = vadd.f32 %v2794_v42, %v2793_v41  ;;  %v3866_v41 = vpop.f32.mrf.mxu1 }
 0x139   : > { %v2796_v45 = vpop.f32.mrf.mxu0 }
 0x13b   : > { %v2797_v46 = vpop.f32.mrf.mxu0 }
 0x13c   : > { %v3832_v47 = vadd.f32 %v2797_v46, %v2796_v45 }
 0x13d   : > { %v2799_v49 = vpop.f32.mrf.mxu0 }
 0x13f   : > { %v2800_v50 = vpop.f32.mrf.mxu0 }
 0x140   : > { %v3836_v51 = vadd.f32 %v2800_v50, %v2799_v49  ;;  %v3870_v49 = vpop.f32.mrf.mxu1 }
 0x141   : > { %v2802_v53 = vpop.f32.mrf.mxu0 }
 0x143   : > { %v2803_v54 = vpop.f32.mrf.mxu0 }
 0x144   : > { %v3840_v55 = vadd.f32 %v2803_v54, %v2802_v53 }
 0x145   : > { %v2805_v57 = vpop.f32.mrf.mxu0 }
 0x147   : > { %v2806_v58 = vpop.f32.mrf.mxu0 }
 0x148   : > { %v3844_v60 = vadd.f32 %v2806_v58, %v2805_v57  ;;  %v3874_v57 = vpop.f32.mrf.mxu1 }
 0x149   : > { %v2808_v1 = vpop.f32.mrf.mxu0 }
 0x14b   : > { %v2809_v4 = vpop.f32.mrf.mxu0 }
 0x14c   : > { %v3848_v5 = vadd.f32 %v2809_v4, %v2808_v1  ;;  %v2850_v4 = vadd.f32 %v3778_v62, %v3774_v59  ;;  %v2856_v62 = vadd.f32 %v3792_v11, %v3788_v7 }
 0x14d   : > { %v2811_v9 = vpop.f32.mrf.mxu0 }
 0x14f   : > { %v2812_v12 = vpop.f32.mrf.mxu0 }
 0x150   : > { %v3852_v13 = vadd.f32 %v2812_v12, %v2811_v9  ;;  %v3880_v12 = vpop.f32.mrf.mxu1 }
 0x151   : > { %v2814_v17 = vpop.f32.mrf.mxu0 }
 0x153   : > { %v2815_v20 = vpop.f32.mrf.mxu0 }
 0x154   : > { %v3856_v22 = vadd.f32 %v2815_v20, %v2814_v17 }
 0x155   : > { %v2817_v26 = vpop.f32.mrf.mxu0 }
 0x157   : > { %v2818_v29 = vpop.f32.mrf.mxu0 }
 0x158   : > { %v3860_v30 = vadd.f32 %v2818_v29, %v2817_v26  ;;  %v1295_v26 = vadd.f32 %v2850_v4, %v3776_v61  ;;  %v2853_v29 = vadd.f32 %v3784_v3, %v3780_v0  ;;  %v1542_v3 = vld [vmem:[%s4485_s3] sm:$0xff]  ;;  %v1303_v4 = vadd.f32 %v2856_v62, %v3786_v6 }
 0x159   : > { %v2820_v34 = vpop.f32.mrf.mxu0  ;;  %v2862_v6 = vadd.f32 %v3814_v28, %v3810_v24 }
 0x15a   : > { %v1298_v59 = vadd.f32 %v2853_v29, %v3782_v2  ;;  %v2859_v2 = vadd.f32 %v3800_v19, %v3796_v15 }
 0x15b   : > { %v2821_v37 = vpop.f32.mrf.mxu0 }
 0x15c   : > { %v3864_v38 = vadd.f32 %v2821_v37, %v2820_v34  ;;  %v3885_v37 = vpop.f32.mrf.mxu1  ;;  %v1306_v29 = vadd.f32 %v2859_v2, %v3790_v10 }
 0x15d   : > { %v2823_v42 = vpop.f32.mrf.mxu0 }
 0x15f   : > { %v2824_v45 = vpop.f32.mrf.mxu0 }
 0x160   : > { %v3868_v46 = vadd.f32 %v2824_v45, %v2823_v42 }
 0x161   : > { %v2826_v50 = vpop.f32.mrf.mxu0 }
 0x163   : > { %v2827_v53 = vpop.f32.mrf.mxu0 }
 0x164   : > { %v3872_v54 = vadd.f32 %v2827_v53, %v2826_v50 }
 0x165   : > { %v2829_v58 = vpop.f32.mrf.mxu0 }
 0x167   : > { %v2830_v1 = vpop.f32.mrf.mxu0 }
 0x168   : > { %v3878_v9 = vadd.f32 %v2830_v1, %v2829_v58  ;;  %v3891_v58 = vpop.f32.mrf.mxu1 }
 0x169   : > { %v2936_v17 = vpop.f32.mrf.mxu0 }
 0x16a   : > { %v3900_v7 = vpop.f32.mrf.mxu1 }
 0x16b   : > { %v2937_v20 = vpop.f32.mrf.mxu0 }
 0x16c   : > { %v2938_v34 = vadd.f32 %v2937_v20, %v2936_v17  ;;  %v3907_v15 = vpop.f32.mrf.mxu1 }
 0x16d   : > { %v2939_v42 = vpop.f32.mrf.mxu0 }
 0x16e   : > { %v1424_v45 = vadd.f32 %v2938_v34, %v1295_v26  ;;  %v3913_v10 = vpop.f32.mrf.mxu1 }
 0x16f   : > { %v2940_v50 = vpop.f32.mrf.mxu0 }
 0x170   : > { %v2941_v53 = vadd.f32 %v2940_v50, %v2939_v42  ;;  %3064 = vmatprep.mubr.msk.f32.mxu1 %vm1546_vm0, %v1424_v45  ;;  %v1311_v50 = vadd.f32 %v2862_v6, %v3794_v14  ;;  %v3919_v14 = vpop.f32.mrf.mxu1 }
 0x171   : > { %v2942_v61 = vpop.f32.mrf.mxu0 }
 0x172   : > { %v1427_v1 = vadd.f32 %v2941_v53, %v1298_v59 }
 0x173   : > { %v2943_v0 = vpop.f32.mrf.mxu0 }
 0x174   : > { %v2944_v17 = vadd.f32 %v2943_v0, %v2942_v61  ;;  %3065 = vmatmul.mubr.msk.f32.vlgmr.msra.gmra.mxu1 %vm1546_vm0, %v1427_v1  ;;  %v2868_v61 = vadd.f32 %v3830_v44, %v3826_v40 }
 0x175   : > { %v2945_v11 = vpop.f32.mrf.mxu0  ;;  %3101 = vmatpush3.msra.mxu1 %v3805_v21  ;;  %v2865_v21 = vadd.f32 %v3822_v36, %v3818_v32 }
 0x176   : > { %v1432_v20 = vadd.f32 %v2944_v17, %v1303_v4  ;;  %3102 = vmatprep.subr.mxu1 %v1542_v3  ;;  %v2871_v4 = vadd.f32 %v3838_v52, %v3834_v48 }
 0x177   : > { %v2946_v26 = vpop.f32.mrf.mxu0  ;;  %3103 = vmatpush3.msra.mxu1 %v1542_v3  ;;  %v1314_v53 = vadd.f32 %v2865_v21, %v3798_v18  ;;  %v1319_v3 = vadd.f32 %v2868_v61, %v3808_v23  ;;  %v3925_v18 = vpop.f32.mrf.mxu1 }
 0x178   : > { %v2947_v34 = vadd.f32 %v2946_v26, %v2945_v11  ;;  %3067 = vmatprep.mubr.msk.f32.mxu1 %vm1546_vm0, %v1432_v20  ;;  %v1322_v11 = vadd.f32 %v2871_v4, %v3812_v27  ;;  %v2874_v20 = vadd.f32 %v3846_v63, %v3842_v56  ;;  %v2880_v63 = vadd.f32 %v3862_v33, %v3858_v25 }
 0x179   : > { %v2948_v19 = vpop.f32.mrf.mxu0  ;;  %v2897_v23 = vpop.f32.mrf.mxu1  ;;  %v2886_v33 = vadd.f32 %v3880_v12, %v3874_v57  ;;  %v2892_v12 = vadd.f32 %v3907_v15, %v3900_v7 }
 0x17a   : > { %v1435_v42 = vadd.f32 %v2947_v34, %v1306_v29  ;;  %v1327_v52 = vadd.f32 %v2874_v20, %v3816_v31  ;;  %v2877_v34 = vadd.f32 %v3854_v16, %v3850_v8  ;;  %v1335_v8 = vadd.f32 %v2880_v63, %v3824_v39 }
 0x17b   : > { %v2949_v45 = vpop.f32.mrf.mxu0  ;;  %v2883_v16 = vadd.f32 %v3870_v49, %v3866_v41  ;;  %v1343_v41 = vadd.f32 %v2886_v33, %v3832_v47  ;;  %v2889_v49 = vadd.f32 %v3891_v58, %v3885_v37  ;;  %v1351_v37 = vadd.f32 %v2892_v12, %v3840_v55 }
 0x17c   : > { %v2950_v59 = vadd.f32 %v2949_v45, %v2948_v19  ;;  %3068 = vmatmul.mubr.msk.f32.gmra.mxu1 %vm1546_vm0, %v1435_v42  ;;  %v2899_v42 = vpop.f32.mrf.mxu1  ;;  %v1330_v56 = vadd.f32 %v2877_v34, %v3820_v35  ;;  %v2895_v58 = vadd.f32 %v3919_v14, %v3913_v10  ;;  %v2898_v15 = vadd.f32 %v2897_v23, %v3925_v18 }
 0x17d   : > { %v2951_v62 = vpop.f32.mrf.mxu0  ;;  %v1338_v25 = vadd.f32 %v2883_v16, %v3828_v43  ;;  %v1346_v57 = vadd.f32 %v2889_v49, %v3836_v51 }
 0x17e   : > { %v1440_v24 = vadd.f32 %v2950_v59, %v1311_v50  ;;  %v2900_v59 = vpop.f32.mrf.mxu1  ;;  %v1354_v7 = vadd.f32 %v2895_v58, %v3844_v60  ;;  %v1359_v10 = vadd.f32 %v2898_v15, %v3848_v5  ;;  %v1525_v15 = vld [vmem:[%s3985_s27 + $0x38] sm:$0xff] }
 0x17f   : > { %v2952_v28 = vpop.f32.mrf.mxu0  ;;  %v2901_v14 = vadd.f32 %v2900_v59, %v2899_v42 }
 0x180   : > { %v2953_v1 = vadd.f32 %v2952_v28, %v2951_v62  ;;  %3070 = vmatprep.mubr.msk.f32.mxu1 %vm1546_vm0, %v1440_v24 }
 0x181   : > { %v2954_v0 = vpop.f32.mrf.mxu0  ;;  %v1362_v60 = vadd.f32 %v2901_v14, %v3852_v13  ;;  %v1532_v14 = vld [vmem:[%s3985_s27 + $0x70] sm:$0xff] }
 0x182   : > { %v1443_v32 = vadd.f32 %v2953_v1, %v1314_v53  ;;  %v2902_v53 = vpop.f32.mrf.mxu1 }
 0x183   : > { %v2955_v36 = vpop.f32.mrf.mxu0 }
 0x184   : > { %v2956_v2 = vadd.f32 %v2955_v36, %v2954_v0  ;;  %3071 = vmatmul.mubr.msk.f32.gmra.mxu1 %vm1546_vm0, %v1443_v32  ;;  %v2903_v32 = vpop.f32.mrf.mxu1 }
 0x185   : > { %v2957_v17 = vpop.f32.mrf.mxu0  ;;  %v2904_v18 = vadd.f32 %v2903_v32, %v2902_v53 }
 0x186   : > { %v1448_v40 = vadd.f32 %v2956_v2, %v1319_v3  ;;  %v2905_v2 = vpop.f32.mrf.mxu1 }
 0x187   : > { %v2958_v44 = vpop.f32.mrf.mxu0  ;;  %v1367_v5 = vadd.f32 %v2904_v18, %v3856_v22  ;;  %v1539_v18 = vld [vmem:[%s3985_s27 + $0xa8] sm:$0xff] }
 0x188   : > { %v2959_v26 = vadd.f32 %v2958_v44, %v2957_v17  ;;  %3073 = vmatprep.mubr.msk.f32.mxu1 %vm1546_vm0, %v1448_v40 }
 0x189   : > { %v2960_v29 = vpop.f32.mrf.mxu0 }
 0x18a   : > { %v1451_v6 = vadd.f32 %v2959_v26, %v1322_v11  ;;  %v2906_v11 = vpop.f32.mrf.mxu1 }
 0x18b   : > { %v2961_v48 = vpop.f32.mrf.mxu0  ;;  %v2907_v42 = vadd.f32 %v2906_v11, %v2905_v2 }
 0x18c   : > { %v2962_v19 = vadd.f32 %v2961_v48, %v2960_v29  ;;  %3074 = vmatmul.mubr.msk.f32.gmra.mxu1 %vm1546_vm0, %v1451_v6  ;;  %v2908_v6 = vpop.f32.mrf.mxu1 }
 0x18d   : > { %v2963_v27 = vpop.f32.mrf.mxu0  ;;  %v1370_v13 = vadd.f32 %v2907_v42, %v3860_v30 }
 0x18e   : > { %v1456_v45 = vadd.f32 %v2962_v19, %v1327_v52  ;;  %v2909_v19 = vpop.f32.mrf.mxu1 }
 0x18f   : > { %v2964_v50 = vpop.f32.mrf.mxu0  ;;  %v2910_v53 = vadd.f32 %v2909_v19, %v2908_v6  ;;  %v1519_v6 = vld [vmem:[%s3985_s27 + $0x8] sm:$0xff] }
 0x190   : > { %v2965_v21 = vadd.f32 %v2964_v50, %v2963_v27  ;;  %3076 = vmatprep.mubr.msk.f32.mxu1 %vm1546_vm0, %v1456_v45  ;;  %v1527_v19 = vld [vmem:[%s3985_s27 + $0x48] sm:$0xff] }
 0x191   : > { %v2966_v31 = vpop.f32.mrf.mxu0  ;;  %v1375_v22 = vadd.f32 %v2910_v53, %v3864_v38 }
 0x192   : > { %v1459_v62 = vadd.f32 %v2965_v21, %v1330_v56  ;;  %v2911_v56 = vpop.f32.mrf.mxu1 }
 0x193   : > { %v2967_v24 = vpop.f32.mrf.mxu0 }
 0x194   : > { %v2968_v28 = vadd.f32 %v2967_v24, %v2966_v31  ;;  %3077 = vmatmul.mubr.msk.f32.gmra.mxu1 %vm1546_vm0, %v1459_v62  ;;  %v2912_v62 = vpop.f32.mrf.mxu1 }
 0x195   : > { %v2969_v35 = vpop.f32.mrf.mxu0 }
 0x196   : > { %v1464_v61 = vadd.f32 %v2968_v28, %v1335_v8  ;;  %v2914_v28 = vpop.f32.mrf.mxu1 }
 0x197   : > { %v2970_v1 = vpop.f32.mrf.mxu0 }
 0x198   : > { %v2971_v0 = vadd.f32 %v2970_v1, %v2969_v35  ;;  %3079 = vmatprep.mubr.msk.f32.mxu1 %vm1546_vm0, %v1464_v61  ;;  %v2915_v33 = vpop.f32.mrf.mxu1 }
 0x199   : > { %v2972_v39 = vpop.f32.mrf.mxu0 }
 0x19a   : > { %v1467_v36 = vadd.f32 %v2971_v0, %v1338_v25 }
 0x19b   : > { %v2973_v3 = vpop.f32.mrf.mxu0 }
 0x19c   : > { %v2974_v4 = vadd.f32 %v2973_v3, %v2972_v39  ;;  %3080 = vmatmul.mubr.msk.f32.gmra.mxu1 %vm1546_vm0, %v1467_v36  ;;  %v2913_v36 = vadd.f32 %v2912_v62, %v2911_v56  ;;  %v1534_v56 = vld [vmem:[%s3985_s27 + $0x80] sm:$0xff]  ;;  %v1541_v62 = vld [vmem:[%s3985_s27 + $0xb8] sm:$0xff] }
 0x19d   : > { %v2975_v43 = vpop.f32.mrf.mxu0 }
 0x19e   : > { %v1472_v17 = vadd.f32 %v2974_v4, %v1343_v41  ;;  %v2917_v41 = vpop.f32.mrf.mxu1  ;;  %v1378_v2 = vadd.f32 %v2913_v36, %v3868_v46 }
 0x19f   : > { %v2976_v40 = vpop.f32.mrf.mxu0 }
 0x1a0   : > { %v2977_v44 = vadd.f32 %v2976_v40, %v2975_v43  ;;  %3082 = vmatprep.mubr.msk.f32.mxu1 %vm1546_vm0, %v1472_v17  ;;  %v2916_v43 = vadd.f32 %v2915_v33, %v2914_v28  ;;  %v2918_v38 = vpop.f32.mrf.mxu1 }
 0x1a1   : > { %v2978_v47 = vpop.f32.mrf.mxu0  ;;  %v2919_v11 = vadd.f32 %v2918_v38, %v2917_v41 }
 0x1a2   : > { %v1475_v20 = vadd.f32 %v2977_v44, %v1346_v57  ;;  %v1383_v44 = vadd.f32 %v2916_v43, %v3872_v54  ;;  %v4061_v43 = vld [vmem:[%s4487_s5] ss:$0 sm:$0xff] }
 0x1a3   : > { %v2979_v26 = vpop.f32.mrf.mxu0  ;;  %v1386_v54 = vadd.f32 %v2919_v11, %v3878_v9  ;;  %v1521_v9 = vld [vmem:[%s3985_s27 + $0x18] sm:$0xff] }
 0x1a4   : > { %v2980_v29 = vadd.f32 %v2979_v26, %v2978_v47  ;;  %3083 = vmatmul.mubr.msk.f32.gmra.mxu1 %vm1546_vm0, %v1475_v20 }
 0x1a5   : > { %v2981_v51 = vpop.f32.mrf.mxu0 }
 0x1a6   : > { %v1480_v48 = vadd.f32 %v2980_v29, %v1351_v37  ;;  %v1518_v29 = vld [vmem:[%s3985_s27] sm:$0xff] }
 0x1a7   : > { %v2982_v52 = vpop.f32.mrf.mxu0 }
 0x1a8   : > { %v2983_v34 = vadd.f32 %v2982_v52, %v2981_v51  ;;  %3085 = vmatprep.mubr.msk.f32.mxu1 %vm1546_vm0, %v1480_v48  ;;  %v1520_v51 = vld [vmem:[%s3985_s27 + $0x10] sm:$0xff]  ;;  %v1522_v48 = vld [vmem:[%s3985_s27 + $0x20] sm:$0xff]  ;;  %v1523_v52 = vld [vmem:[%s3985_s27 + $0x28] sm:$0xff] }
 0x1a9   : > { %v2984_v27 = vpop.f32.mrf.mxu0 }
 0x1aa   : > { %v1483_v55 = vadd.f32 %v2983_v34, %v1354_v7  ;;  %v1524_v7 = vld [vmem:[%s3985_s27 + $0x30] sm:$0xff]  ;;  %v1526_v34 = vld [vmem:[%s3985_s27 + $0x40] sm:$0xff] }
 0x1ab   : > { %v2985_v45 = vpop.f32.mrf.mxu0 }
 0x1ac   : > { %v2986_v50 = vadd.f32 %v2985_v45, %v2984_v27  ;;  %3086 = vmatmul.mubr.msk.f32.gmra.mxu1 %vm1546_vm0, %v1483_v55  ;;  %v1528_v27 = vld [vmem:[%s3985_s27 + $0x50] sm:$0xff]  ;;  %v1529_v55 = vld [vmem:[%s3985_s27 + $0x58] sm:$0xff]  ;;  %v1530_v45 = vld [vmem:[%s3985_s27 + $0x60] sm:$0xff] }
 0x1ad   : > { %v2987_v63 = vpop.f32.mrf.mxu0 }
 0x1ae   : > { %v1488_v21 = vadd.f32 %v2986_v50, %v1359_v10  ;;  %v1531_v10 = vld [vmem:[%s3985_s27 + $0x68] sm:$0xff]  ;;  %v1533_v50 = vld [vmem:[%s3985_s27 + $0x78] sm:$0xff] }
 0x1af   : > { %v2988_v31 = vpop.f32.mrf.mxu0 }
 0x1b0   : > { %v2989_v23 = vadd.f32 %v2988_v31, %v2987_v63  ;;  %3088 = vmatprep.mubr.msk.f32.mxu1 %vm1546_vm0, %v1488_v21  ;;  %v1535_v63 = vld [vmem:[%s3985_s27 + $0x88] sm:$0xff]  ;;  %v1536_v21 = vld [vmem:[%s3985_s27 + $0x90] sm:$0xff]  ;;  %v1537_v31 = vld [vmem:[%s3985_s27 + $0x98] sm:$0xff] }
 0x1b1   : > { %v2990_v24 = vpop.f32.mrf.mxu0 }
 0x1b2   : > { %v1491_v8 = vadd.f32 %v2989_v23, %v1362_v60  ;;  %v1538_v60 = vld [vmem:[%s3985_s27 + $0xa0] sm:$0xff]  ;;  %v1540_v23 = vld [vmem:[%s3985_s27 + $0xb0] sm:$0xff] }
 0x1b3   : > { %v2991_v16 = vpop.f32.mrf.mxu0 }
 0x1b4   : > { %v2992_v59 = vadd.f32 %v2991_v16, %v2990_v24  ;;  %3089 = vmatmul.mubr.msk.f32.gmra.mxu1 %vm1546_vm0, %v1491_v8 }
 0x1b5   : > { %v2993_v35 = vpop.f32.mrf.mxu0 }
 0x1b6   : > { %v1496_v61 = vadd.f32 %v2992_v59, %v1367_v5 }
 0x1b7   : > { %v2994_v1 = vpop.f32.mrf.mxu0 }
 0x1b8   : > { %v2995_v25 = vadd.f32 %v2994_v1, %v2993_v35  ;;  %3091 = vmatprep.mubr.msk.f32.mxu1 %vm1546_vm0, %v1496_v61 }
 0x1b9   : > { %v2996_v0 = vpop.f32.mrf.mxu0 }
 0x1ba   : > { %v1499_v32 = vadd.f32 %v2995_v25, %v1370_v13 }
 0x1bb   : > { %v2997_v39 = vpop.f32.mrf.mxu0 }
 0x1bc   : > { %v2998_v3 = vadd.f32 %v2997_v39, %v2996_v0  ;;  %3092 = vmatmul.mubr.msk.f32.gmra.mxu1 %vm1546_vm0, %v1499_v32 }
 0x1bd   : > { %v2999_v49 = vpop.f32.mrf.mxu0 }
 0x1be   : > { %v1504_v4 = vadd.f32 %v2998_v3, %v1375_v22 }
 0x1bf   : > { %v3000_v30 = vpop.f32.mrf.mxu0 }
 0x1c0   : > { %v3001_v17 = vadd.f32 %v3000_v30, %v2999_v49  ;;  %3094 = vmatprep.mubr.msk.f32.mxu1 %vm1546_vm0, %v1504_v4 }
 0x1c1   : > { %v3002_v40 = vpop.f32.mrf.mxu0 }
 0x1c2   : > { %v1507_v57 = vadd.f32 %v3001_v17, %v1378_v2 }
 0x1c3   : > { %v3003_v12 = vpop.f32.mrf.mxu0 }
 0x1c4   : > { %v3004_v47 = vadd.f32 %v3003_v12, %v3002_v40  ;;  %3095 = vmatmul.mubr.msk.f32.gmra.mxu1 %vm1546_vm0, %v1507_v57 }
 0x1c5   : > { %v3005_v46 = vpop.f32.mrf.mxu0 }
 0x1c6   : > { %v1512_v20 = vadd.f32 %v3004_v47, %v1383_v44 }
 0x1c7   : > { %v3006_v26 = vpop.f32.mrf.mxu0 }
 0x1c8   : > { %v3007_v37 = vadd.f32 %v3006_v26, %v3005_v46  ;;  %3097 = vmatprep.mubr.msk.f32.mxu1 %vm1546_vm0, %v1512_v20 }
 0x1ca   : > { %v1515_v58 = vadd.f32 %v3007_v37, %v1386_v54 }
 0x1cc   : > { %3098 = vmatmul.mubr.msk.f32.gmra.mxu1 %vm1546_vm0, %v1515_v58 }
 0x1cd   : > { %3104 = vmatprep.mubr.msk.f32.mxu1 %vm1546_vm0, %v1518_v29 }
 0x1d0   : > { %3105 = vmatmul.mubr.msk.f32.vlgmr.msra.gmra.mxu1 %vm1546_vm0, %v1519_v6 }
 0x1d1   : > { %3107 = vmatprep.mubr.msk.f32.mxu1 %vm1546_vm0, %v1520_v51 }
 0x1d4   : > { %3108 = vmatmul.mubr.msk.f32.gmra.mxu1 %vm1546_vm0, %v1521_v9 }
 0x1d5   : > { %3110 = vmatprep.mubr.msk.f32.mxu1 %vm1546_vm0, %v1522_v48 }
 0x1d8   : > { %3111 = vmatmul.mubr.msk.f32.gmra.mxu1 %vm1546_vm0, %v1523_v52 }
 0x1d9   : > { %3113 = vmatprep.mubr.msk.f32.mxu1 %vm1546_vm0, %v1524_v7 }
 0x1dc   : > { %3114 = vmatmul.mubr.msk.f32.gmra.mxu1 %vm1546_vm0, %v1525_v15 }
 0x1dd   : > { %3116 = vmatprep.mubr.msk.f32.mxu1 %vm1546_vm0, %v1526_v34 }
 0x1e0   : > { %3117 = vmatmul.mubr.msk.f32.gmra.mxu1 %vm1546_vm0, %v1527_v19 }
 0x1e1   : > { %3119 = vmatprep.mubr.msk.f32.mxu1 %vm1546_vm0, %v1528_v27 }
 0x1e4   : > { %3120 = vmatmul.mubr.msk.f32.gmra.mxu1 %vm1546_vm0, %v1529_v55 }
 0x1e5   : > { %3122 = vmatprep.mubr.msk.f32.mxu1 %vm1546_vm0, %v1530_v45 }
 0x1e8   : > { %3123 = vmatmul.mubr.msk.f32.gmra.mxu1 %vm1546_vm0, %v1531_v10 }
 0x1e9   : > { %3125 = vmatprep.mubr.msk.f32.mxu1 %vm1546_vm0, %v1532_v14 }
 0x1ec   : > { %3126 = vmatmul.mubr.msk.f32.gmra.mxu1 %vm1546_vm0, %v1533_v50 }
 0x1ed   : > { %3128 = vmatprep.mubr.msk.f32.mxu1 %vm1546_vm0, %v1534_v56 }
 0x1f0   : > { %3129 = vmatmul.mubr.msk.f32.gmra.mxu1 %vm1546_vm0, %v1535_v63 }
 0x1f1   : > { %3131 = vmatprep.mubr.msk.f32.mxu1 %vm1546_vm0, %v1536_v21 }
 0x1f4   : > { %3132 = vmatmul.mubr.msk.f32.gmra.mxu1 %vm1546_vm0, %v1537_v31 }
 0x1f5   : > { %3134 = vmatprep.mubr.msk.f32.mxu1 %vm1546_vm0, %v1538_v60 }
 0x1f8   : > { %3135 = vmatmul.mubr.msk.f32.gmra.mxu1 %vm1546_vm0, %v1539_v18 }
 0x1f9   : > { %3137 = vmatprep.mubr.msk.f32.mxu1 %vm1546_vm0, %v1540_v23 }
 0x1fc   : > { %3138 = vmatmul.mubr.msk.f32.gmra.mxu1 %vm1546_vm0, %v1541_v62 }
 0x234   : > { %v3066_v24 = vpop.f32.mrf.mxu1 }
 0x236   : > { %v1685_v8 = vpop.f32.mrf.mxu1 }
 0x23c   : > { %v3069_v16 = vpop.f32.mrf.mxu1 }
 0x23e   : > { %v1695_v5 = vpop.f32.mrf.mxu1 }
 0x244   : > { %v3072_v42 = vpop.f32.mrf.mxu1 }
 0x246   : > { %v1705_v59 = vpop.f32.mrf.mxu1 }
 0x24c   : > { %v3075_v28 = vpop.f32.mrf.mxu1 }
 0x24e   : > { %v1715_v35 = vpop.f32.mrf.mxu1 }
 0x254   : > { %v3078_v61 = vpop.f32.mrf.mxu1 }
 0x256   : > { %v1725_v1 = vpop.f32.mrf.mxu1 }
 0x25c   : > { %v3081_v13 = vpop.f32.mrf.mxu1 }
 0x25e   : > { %v1735_v53 = vpop.f32.mrf.mxu1 }
 0x264   : > { %v3084_v25 = vpop.f32.mrf.mxu1 }
 0x266   : > { %v1745_v33 = vpop.f32.mrf.mxu1 }
 0x26c   : > { %v4038_v0 = vpop.f32.mrf.mxu1 }
 0x26e   : > { %v4040_v32 = vpop.f32.mrf.mxu1 }
 0x274   : > { %v4042_v39 = vpop.f32.mrf.mxu1 }
 0x276   : > { %v4044_v22 = vpop.f32.mrf.mxu1 }
 0x27c   : > { %v4046_v36 = vpop.f32.mrf.mxu1 }
 0x27e   : > { %v4048_v3 = vpop.f32.mrf.mxu1 }
 0x284   : > { %v4050_v41 = vpop.f32.mrf.mxu1 }
 0x286   : > { %v4052_v49 = vpop.f32.mrf.mxu1 }
 0x28c   : > { %v4054_v4 = vpop.f32.mrf.mxu1 }
 0x28e   : > { %v4056_v30 = vpop.f32.mrf.mxu1 }
 0x290   : > { %v3106_v2 = vpop.f32.mrf.mxu1 }
 0x291   : > { %v1948_v17 = vadd.f32 %v3106_v2, %v3066_v24 }
 0x292   : > { %v1942_v38 = vpop.f32.mrf.mxu1 }
 0x293   : > { %v4064_v40 = vadd.f32 %v4061_v43, %v1948_v17  ;;  %v1943_v57 = vadd.f32 %v1942_v38, %v1685_v8 }
 0x294   : > { %v3109_v12 = vpop.f32.mrf.mxu1 }
 0x295   : > { %v1958_v44 = vadd.f32 %v3109_v12, %v3069_v16  ;;  %2214 = vrot.lane.b32.xlu0 %v4064_v40, %s3443_s9  ;;  %v4069_v47 = vadd.f32 %v4061_v43, %v1943_v57  ;;  %vm2093_vm1 = vcmp.ge.f32.partialorder %v4064_v40, 0.0 }
 0x296   : > { %v1952_v11 = vpop.f32.mrf.mxu1 }
 0x297   : > { %v4072_v46 = vadd.f32 %v4061_v43, %v1958_v44  ;;  %v1953_v20 = vadd.f32 %v1952_v11, %v1695_v5  ;;  %vm2092_vm3 = vcmp.ge.f32.partialorder %v4069_v47, 0.0 }
 0x298   : > { %v3112_v26 = vpop.f32.mrf.mxu1 }
 0x299   : > { %2218 = vrot.lane.b32.xlu1 %v4072_v46, %s3443_s9  ;;  %2212 = vrot.lane.b32.xlu0 %v4069_v47, %s3443_s9  ;;  %v4079_v37 = vadd.f32 %v4061_v43, %v1953_v20  ;;  %v1968_v58 = vadd.f32 %v3112_v26, %v3072_v42  ;;  %vm2095_vm2 = vcmp.ge.f32.partialorder %v4072_v46, 0.0 }
 0x29a   : > { %v1962_v54 = vpop.f32.mrf.mxu1 }
 0x29b   : > { %v1963_v29 = vadd.f32 %v1962_v54, %v1705_v59  ;;  %v4087_v48 = vadd.f32 %v4061_v43, %v1968_v58  ;;  %vm2094_vm4 = vcmp.ge.f32.partialorder %v4079_v37, 0.0 }
 0x29c   : > { %v3115_v6 = vpop.f32.mrf.mxu1 }
 0x29d   : > { %v4082_v51 = vadd.f32 %v4061_v43, %v1963_v29  ;;  %2216 = vrot.lane.b32.xlu1 %v4079_v37, %s3443_s9  ;;  %v1978_v52 = vadd.f32 %v3115_v6, %v3075_v28  ;;  %vm2097_vm6 = vcmp.ge.f32.partialorder %v4087_v48, 0.0 }
 0x29e   : > { %v1972_v9 = vpop.f32.mrf.mxu1 }
 0x29f   : > { %v1973_v7 = vadd.f32 %v1972_v9, %v1715_v35  ;;  %2220 = vrot.lane.b32.xlu0 %v4082_v51, %s3443_s9  ;;  %v4097_v27 = vadd.f32 %v4061_v43, %v1978_v52  ;;  %vm2096_vm5 = vcmp.ge.f32.partialorder %v4082_v51, 0.0 }
 0x2a0   : > { %v3118_v15 = vpop.f32.mrf.mxu1 }
 0x2a1   : > { %v4092_v34 = vadd.f32 %v4061_v43, %v1973_v7  ;;  %2222 = vrot.lane.b32.xlu1 %v4087_v48, %s3443_s9  ;;  %v1988_v55 = vadd.f32 %v3118_v15, %v3078_v61  ;;  %vm2099_vm8 = vcmp.ge.f32.partialorder %v4097_v27, 0.0 }
 0x2a2   : > { %v1982_v19 = vpop.f32.mrf.mxu1 }
 0x2a3   : > { %v1983_v45 = vadd.f32 %v1982_v19, %v1725_v1  ;;  %2224 = vrot.lane.b32.xlu0 %v4092_v34, %s3443_s9  ;;  %v4107_v56 = vadd.f32 %v4061_v43, %v1988_v55  ;;  %vm2098_vm7 = vcmp.ge.f32.partialorder %v4092_v34, 0.0 }
 0x2a4   : > { %v3121_v10 = vpop.f32.mrf.mxu1 }
 0x2a5   : > { %v4102_v14 = vadd.f32 %v4061_v43, %v1983_v45  ;;  %2226 = vrot.lane.b32.xlu1 %v4097_v27, %s3443_s9  ;;  %v1998_v63 = vadd.f32 %v3121_v10, %v3081_v13  ;;  %vm2101_vm10 = vcmp.ge.f32.partialorder %v4107_v56, 0.0 }
 0x2a6   : > { %v1992_v50 = vpop.f32.mrf.mxu1 }
 0x2a7   : > { %v1993_v21 = vadd.f32 %v1992_v50, %v1735_v53  ;;  %2228 = vrot.lane.b32.xlu0 %v4102_v14, %s3443_s9  ;;  %v4117_v23 = vadd.f32 %v4061_v43, %v1998_v63  ;;  %vm2100_vm9 = vcmp.ge.f32.partialorder %v4102_v14, 0.0 }
 0x2a8   : > { %v3124_v31 = vpop.f32.mrf.mxu1 }
 0x2a9   : > { %v4112_v60 = vadd.f32 %v4061_v43, %v1993_v21  ;;  %2230 = vrot.lane.b32.xlu1 %v4107_v56, %s3443_s9  ;;  %v2008_v62 = vadd.f32 %v3124_v31, %v3084_v25  ;;  %vm2103_vm12 = vcmp.ge.f32.partialorder %v4117_v23, 0.0 }
 0x2aa   : > { %v2002_v18 = vpop.f32.mrf.mxu1 }
 0x2ab   : > { %v2003_v24 = vadd.f32 %v2002_v18, %v1745_v33  ;;  %2232 = vrot.lane.b32.xlu0 %v4112_v60, %s3443_s9  ;;  %v4127_v42 = vadd.f32 %v4061_v43, %v2008_v62  ;;  %vm2102_vm11 = vcmp.ge.f32.partialorder %v4112_v60, 0.0 }
 0x2ac   : > { %v3127_v8 = vpop.f32.mrf.mxu1 }
 0x2ad   : > { %v4122_v16 = vadd.f32 %v4061_v43, %v2003_v24  ;;  %2234 = vrot.lane.b32.xlu1 %v4117_v23, %s3443_s9  ;;  %v2018_v59 = vadd.f32 %v3127_v8, %v4038_v0  ;;  %vm2105_vm14 = vcmp.ge.f32.partialorder %v4127_v42, 0.0 }
 0x2ae   : > { %v2012_v5 = vpop.f32.mrf.mxu1 }
 0x2af   : > { %v2013_v28 = vadd.f32 %v2012_v5, %v4040_v32  ;;  %2236 = vrot.lane.b32.xlu0 %v4122_v16, %s3443_s9  ;;  %v4139_v13 = vadd.f32 %v4061_v43, %v2018_v59  ;;  %vm2104_vm13 = vcmp.ge.f32.partialorder %v4122_v16, 0.0 }
 0x2b0   : > { %v3130_v35 = vpop.f32.mrf.mxu1 }
 0x2b1   : > { %v4134_v61 = vadd.f32 %v4061_v43, %v2013_v28  ;;  %2238 = vrot.lane.b32.xlu1 %v4127_v42, %s3443_s9  ;;  %v2028_v53 = vadd.f32 %v3130_v35, %v4042_v39 }
 0x2b2   : > { %v2022_v1 = vpop.f32.mrf.mxu1 }
 0x2b3   : > { %v2023_v25 = vadd.f32 %v2022_v1, %v4044_v22  ;;  %2240 = vrot.lane.b32.xlu0 %v4134_v61, %s3443_s9  ;;  %v4151_v2 = vadd.f32 %v4061_v43, %v2028_v53  ;;  %vm2106_vm15 = vcmp.ge.f32.partialorder %v4134_v61, 0.0 }
 0x2b4   : > { %v3133_v33 = vpop.f32.mrf.mxu1 }
 0x2b5   : > { %v4146_v0 = vadd.f32 %v4061_v43, %v2023_v25  ;;  %2242 = vrot.lane.b32.xlu1 %v4139_v13, %s3443_s9  ;;  %v2038_v17 = vadd.f32 %v3133_v33, %v4046_v36 }
 0x2b6   : > { %v2032_v32 = vpop.f32.mrf.mxu1 }
 0x2b7   : > { %v2033_v39 = vadd.f32 %v2032_v32, %v4048_v3  ;;  %2244 = vrot.lane.b32.xlu0 %v4146_v0, %s3443_s9  ;;  %v4163_v12 = vadd.f32 %v4061_v43, %v2038_v17 }
 0x2b8   : > { %v3136_v22 = vpop.f32.mrf.mxu1 }
 0x2b9   : > { %v4158_v38 = vadd.f32 %v4061_v43, %v2033_v39  ;;  %2246 = vrot.lane.b32.xlu1 %v4151_v2, %s3443_s9  ;;  %v2048_v44 = vadd.f32 %v3136_v22, %v4050_v41 }
 0x2ba   : > { %v2042_v57 = vpop.f32.mrf.mxu1 }
 0x2bb   : > { %v2043_v36 = vadd.f32 %v2042_v57, %v4052_v49  ;;  %2248 = vrot.lane.b32.xlu0 %v4158_v38, %s3443_s9  ;;  %v4175_v26 = vadd.f32 %v4061_v43, %v2048_v44 }
 0x2bc   : > { %v3139_v3 = vpop.f32.mrf.mxu1 }
 0x2bd   : > { %v4170_v11 = vadd.f32 %v4061_v43, %v2043_v36  ;;  %2250 = vrot.lane.b32.xlu1 %v4163_v12, %s3443_s9  ;;  %v2058_v54 = vadd.f32 %v3139_v3, %v4054_v4 }
 0x2be   : > { %v2052_v20 = vpop.f32.mrf.mxu1 }
 0x2bf   : > { %v2053_v41 = vadd.f32 %v2052_v20, %v4056_v30  ;;  %2252 = vrot.lane.b32.xlu0 %v4170_v11, %s3443_s9  ;;  %v4187_v58 = vadd.f32 %v4061_v43, %v2058_v54  ;;  %v3444_v30 = vmov 0.0  }
 0x2c0   : > { %v4195_v29 = vsel %vm2093_vm1, 1.0, %v3444_v30  ;;  %v4202_v9 = vsel %vm2095_vm2, 1.0, %v3444_v30  ;;  %v4205_v7 = vsel %vm2092_vm3, 1.0, %v3444_v30  ;;  %v4213_v45 = vsel %vm2094_vm4, 1.0, %v3444_v30 }
 0x2c1   : > { %v4182_v49 = vadd.f32 %v4061_v43, %v2053_v41  ;;  %2254 = vrot.lane.b32.xlu1 %v4175_v26, %s3443_s9  ;;  %v4220_v63 = vsel %vm2096_vm5, 1.0, %v3444_v30  ;;  %v4223_v21 = vsel %vm2097_vm6, 1.0, %v3444_v30  ;;  %v4232_v8 = vsel %vm2098_vm7, 1.0, %v3444_v30 }
 0x2c2   : > { %v4235_v5 = vsel %vm2099_vm8, 1.0, %v3444_v30  ;;  %v4244_v53 = vsel %vm2100_vm9, 1.0, %v3444_v30  ;;  %v4247_v25 = vsel %vm2101_vm10, 1.0, %v3444_v30  ;;  %v4256_v22 = vsel %vm2102_vm11, 1.0, %v3444_v30 }
 0x2c3   : > { %2256 = vrot.lane.b32.xlu0 %v4182_v49, %s3443_s9  ;;  %v4259_v57 = vsel %vm2103_vm12, 1.0, %v3444_v30  ;;  %v4268_v54 = vsel %vm2104_vm13, 1.0, %v3444_v30  ;;  %v4271_v41 = vsel %vm2105_vm14, 1.0, %v3444_v30  ;;  %vm2107_vm1 = vcmp.ge.f32.partialorder %v4139_v13, 0.0 }
 0x2c4   : > { %vm2108_vm2 = vcmp.ge.f32.partialorder %v4146_v0, 0.0  ;;  %vm2109_vm3 = vcmp.ge.f32.partialorder %v4151_v2, 0.0  ;;  %vm2110_vm4 = vcmp.ge.f32.partialorder %v4158_v38, 0.0  ;;  %vm2111_vm5 = vcmp.ge.f32.partialorder %v4163_v12, 0.0 }
 0x2c5   : > { %2258 = vrot.lane.b32.xlu1 %v4187_v58, %s3443_s9  ;;  %vm2112_vm6 = vcmp.ge.f32.partialorder %v4170_v11, 0.0  ;;  %vm2113_vm7 = vcmp.ge.f32.partialorder %v4175_v26, 0.0  ;;  %vm2114_vm8 = vcmp.ge.f32.partialorder %v4182_v49, 0.0  ;;  %vm2115_vm9 = vcmp.ge.f32.partialorder %v4187_v58, 0.0 }
 0x2c6   : > { %vm2428_vm10 = vcmask 261120  }
 0x307   : > { %v2215_v4 = vpop.permute.xlu0 %2214 }
 0x308   : > { %v2285_v6 = vmul.f32 %v4195_v29, %v2215_v4 }
 0x30a   : > { %2334 = vrot.lane.b32.xlu1 %v2285_v6, %s3445_s10 }
 0x30b   : > { %v2219_v43 = vpop.permute.xlu1 %2218  ;;  %v2213_v52 = vpop.permute.xlu0 %2212 }
 0x30c   : > { %v2287_v15 = vmul.f32 %v4202_v9, %v2219_v43  ;;  %v2284_v19 = vmul.f32 %v4205_v7, %v2213_v52 }
 0x30e   : > { %2338 = vrot.lane.b32.xlu1 %v2287_v15, %s3445_s10  ;;  %2332 = vrot.lane.b32.xlu0 %v2284_v19, %s3445_s10  ;;  %v4280_v15 = vsel %vm2106_vm15, 1.0, %v3444_v30  ;;  %v4283_v19 = vsel %vm2107_vm1, 1.0, %v3444_v30 }
 0x30f   : > { %v2217_v55 = vpop.permute.xlu1 %2216 }
 0x310   : > { %v2286_v10 = vmul.f32 %v4213_v45, %v2217_v55 }
 0x311   : > { %v2221_v50 = vpop.permute.xlu0 %2220 }
 0x312   : > { %2336 = vrot.lane.b32.xlu0 %v2286_v10, %s3445_s10  ;;  %v2288_v18 = vmul.f32 %v4220_v63, %v2221_v50 }
 0x313   : > { %v2223_v31 = vpop.permute.xlu1 %2222 }
 0x314   : > { %v2289_v62 = vmul.f32 %v4223_v21, %v2223_v31 }
 0x315   : > { %v2225_v24 = vpop.permute.xlu0 %2224 }
 0x316   : > { %2342 = vrot.lane.b32.xlu1 %v2289_v62, %s3445_s10  ;;  %2340 = vrot.lane.b32.xlu0 %v2288_v18, %s3445_s10  ;;  %v2290_v28 = vmul.f32 %v4232_v8, %v2225_v24  ;;  %v4292_v18 = vsel %vm2108_vm2, 1.0, %v3444_v30  ;;  %v4295_v62 = vsel %vm2109_vm3, 1.0, %v3444_v30 }
 0x317   : > { %v2227_v59 = vpop.permute.xlu1 %2226 }
 0x318   : > { %v2291_v35 = vmul.f32 %v4235_v5, %v2227_v59 }
 0x319   : > { %v2229_v1 = vpop.permute.xlu0 %2228 }
 0x31a   : > { %2346 = vrot.lane.b32.xlu1 %v2291_v35, %s3445_s10  ;;  %2344 = vrot.lane.b32.xlu0 %v2290_v28, %s3445_s10  ;;  %v2292_v32 = vmul.f32 %v4244_v53, %v2229_v1  ;;  %v4304_v1 = vsel %vm2110_vm4, 1.0, %v3444_v30 }
 0x31b   : > { %v2231_v33 = vpop.permute.xlu1 %2230 }
 0x31c   : > { %v2293_v17 = vmul.f32 %v4247_v25, %v2231_v33  ;;  %v4307_v33 = vsel %vm2111_vm5, 1.0, %v3444_v30 }
 0x31d   : > { %v2233_v39 = vpop.permute.xlu0 %2232 }
 0x31e   : > { %2350 = vrot.lane.b32.xlu1 %v2293_v17, %s3445_s10  ;;  %2348 = vrot.lane.b32.xlu0 %v2292_v32, %s3445_s10  ;;  %v2294_v36 = vmul.f32 %v4256_v22, %v2233_v39 }
 0x31f   : > { %v2235_v44 = vpop.permute.xlu1 %2234 }
 0x320   : > { %v2295_v3 = vmul.f32 %v4259_v57, %v2235_v44 }
 0x321   : > { %v2237_v20 = vpop.permute.xlu0 %2236 }
 0x322   : > { %2354 = vrot.lane.b32.xlu1 %v2295_v3, %s3445_s10  ;;  %2352 = vrot.lane.b32.xlu0 %v2294_v36, %s3445_s10  ;;  %v2296_v6 = vmul.f32 %v4268_v54, %v2237_v20  ;;  %v4316_v36 = vsel %vm2112_vm6, 1.0, %v3444_v30  ;;  %v4319_v3 = vsel %vm2113_vm7, 1.0, %v3444_v30 }
 0x323   : > { %v2239_v4 = vpop.permute.xlu1 %2238 }
 0x324   : > { %v2297_v43 = vmul.f32 %v4271_v41, %v2239_v4 }
 0x325   : > { %v2241_v52 = vpop.permute.xlu0 %2240 }
 0x326   : > { %2358 = vrot.lane.b32.xlu1 %v2297_v43, %s3445_s10  ;;  %2356 = vrot.lane.b32.xlu0 %v2296_v6, %s3445_s10  ;;  %v2298_v10 = vmul.f32 %v4280_v15, %v2241_v52  ;;  %v4328_v52 = vsel %vm2114_vm8, 1.0, %v3444_v30 }
 0x327   : > { %v2243_v55 = vpop.permute.xlu1 %2242 }
 0x328   : > { %v2299_v50 = vmul.f32 %v4283_v19, %v2243_v55  ;;  %v4331_v55 = vsel %vm2115_vm9, 1.0, %v3444_v30  ;;  %v2165_v30 = vmul.f32 %v4195_v29, %v4064_v40  ;;  %v2166_v29 = vmul.f32 %v4213_v45, %v4079_v37 }
 0x329   : > { %v2245_v31 = vpop.permute.xlu0 %2244  ;;  %v2170_v37 = vmul.f32 %v4232_v8, %v4092_v34  ;;  %v2173_v34 = vmul.f32 %v4247_v25, %v4107_v56 }
 0x32a   : > { %2362 = vrot.lane.b32.xlu1 %v2299_v50, %s3445_s10  ;;  %2360 = vrot.lane.b32.xlu0 %v2298_v10, %s3445_s10  ;;  %v2300_v59 = vmul.f32 %v4292_v18, %v2245_v31 }
 0x32b   : > { %v2247_v24 = vpop.permute.xlu1 %2246 }
 0x32c   : > { %v2301_v28 = vmul.f32 %v4295_v62, %v2247_v24 }
 0x32d   : > { %v2249_v35 = vpop.permute.xlu0 %2248 }
 0x32e   : > { %2366 = vrot.lane.b32.xlu1 %v2301_v28, %s3445_s10  ;;  %2364 = vrot.lane.b32.xlu0 %v2300_v59, %s3445_s10  ;;  %v2302_v17 = vmul.f32 %v4304_v1, %v2249_v35  ;;  %v2167_v28 = vmul.f32 %v4202_v9, %v4072_v46  ;;  %v2164_v35 = vmul.f32 %v4205_v7, %v4069_v47 }
 0x32f   : > { %v2251_v32 = vpop.permute.xlu1 %2250  ;;  %v2168_v47 = vmul.f32 %v4220_v63, %v4082_v51  ;;  %v2169_v9 = vmul.f32 %v4223_v21, %v4087_v48  ;;  %v2171_v51 = vmul.f32 %v4235_v5, %v4097_v27 }
 0x330   : > { %v2303_v39 = vmul.f32 %v4307_v33, %v2251_v32 }
 0x331   : > { %v2253_v44 = vpop.permute.xlu0 %2252 }
 0x332   : > { %2370 = vrot.lane.b32.xlu1 %v2303_v39, %s3445_s10  ;;  %2368 = vrot.lane.b32.xlu0 %v2302_v17, %s3445_s10  ;;  %v2304_v4 = vmul.f32 %v4316_v36, %v2253_v44 }
 0x333   : > { %v2255_v20 = vpop.permute.xlu1 %2254 }
 0x334   : > { %v2305_v6 = vmul.f32 %v4319_v3, %v2255_v20 }
 0x335   : > { %v2257_v43 = vpop.permute.xlu0 %2256 }
 0x336   : > { %2374 = vrot.lane.b32.xlu1 %v2305_v6, %s3445_s10  ;;  %2372 = vrot.lane.b32.xlu0 %v2304_v4, %s3445_s10  ;;  %v2306_v50 = vmul.f32 %v4328_v52, %v2257_v43  ;;  %v2172_v43 = vmul.f32 %v4244_v53, %v4102_v14  ;;  %v2175_v14 = vmul.f32 %v4259_v57, %v4117_v23 }
 0x337   : > { %v2259_v10 = vpop.permute.xlu1 %2258 }
 0x338   : > { %v2307_v31 = vmul.f32 %v4331_v55, %v2259_v10 }
 0x33a   : > { %2378 = vrot.lane.b32.xlu1 %v2307_v31, %s3445_s10  ;;  %2376 = vrot.lane.b32.xlu0 %v2306_v50, %s3445_s10  ;;  %v2174_v50 = vmul.f32 %v4256_v22, %v4112_v60  ;;  %v2177_v60 = vmul.f32 %v4271_v41, %v4127_v42 }
 0x37c   : > { %v2335_v24 = vpop.permute.xlu1 %2334 }
 0x37d   : > { %v2405_v59 = vsel %vm1546_vm0, %v2165_v30, %v2335_v24  ;;  %v2176_v30 = vmul.f32 %v4268_v54, %v4122_v16  ;;  %v2179_v16 = vmul.f32 %v4283_v19, %v4139_v13 }
 0x37e   : > { %2430 = vst.msk [vmem:[%s4342_s16 + $0x8] sm:$0xff] %vm2428_vm10, %v2405_v59  ;;  %v2178_v59 = vmul.f32 %v4280_v15, %v4134_v61  ;;  %v2181_v61 = vmul.f32 %v4295_v62, %v4151_v2 }
 0x380   : > { %v2339_v32 = vpop.permute.xlu1 %2338  ;;  %v2333_v17 = vpop.permute.xlu0 %2332 }
 0x381   : > { %v2407_v39 = vsel %vm1546_vm0, %v2167_v28, %v2339_v32  ;;  %v2404_v40 = vsel %vm1546_vm0, %v2164_v35, %v2333_v17  ;;  %v2180_v35 = vmul.f32 %v4292_v18, %v4146_v0  ;;  %v2182_v17 = vmul.f32 %v4304_v1, %v4158_v38 }
 0x382   : > { %2432 = vst.msk [vmem:[%s4342_s16 + $0x18] sm:$0xff] %vm2428_vm10, %v2407_v39  ;;  %2429 = vst.msk [vmem:[%s4342_s16] sm:$0xff] %vm2428_vm10, %v2404_v40  ;;  %v2183_v0 = vmul.f32 %v4307_v33, %v4163_v12  ;;  %v2184_v40 = vmul.f32 %v4316_v36, %v4170_v11  ;;  %v2185_v38 = vmul.f32 %v4319_v3, %v4175_v26 }
 0x384   : > { %v2337_v44 = vpop.permute.xlu0 %2336 }
 0x385   : > { %v2406_v46 = vsel %vm1546_vm0, %v2166_v29, %v2337_v44  ;;  %v2186_v44 = vmul.f32 %v4328_v52, %v4182_v49 }
 0x386   : > { %2431 = vst.msk [vmem:[%s4342_s16 + $0x10] sm:$0xff] %vm2428_vm10, %v2406_v46  ;;  %v2187_v46 = vmul.f32 %v4331_v55, %v4187_v58 }
 0x388   : > { %v2343_v7 = vpop.permute.xlu1 %2342  ;;  %v2341_v20 = vpop.permute.xlu0 %2340 }
 0x389   : > { %v2409_v4 = vsel %vm1546_vm0, %v2169_v9, %v2343_v7  ;;  %v2408_v6 = vsel %vm1546_vm0, %v2168_v47, %v2341_v20 }
 0x38a   : > { %2434 = vst.msk [vmem:[%s4342_s16 + $0x28] sm:$0xff] %vm2428_vm10, %v2409_v4  ;;  %2433 = vst.msk [vmem:[%s4342_s16 + $0x20] sm:$0xff] %vm2428_vm10, %v2408_v6 }
 0x38c   : > { %v2347_v45 = vpop.permute.xlu1 %2346  ;;  %v2345_v48 = vpop.permute.xlu0 %2344 }
 0x38d   : > { %v2411_v63 = vsel %vm1546_vm0, %v2171_v51, %v2347_v45  ;;  %v2410_v21 = vsel %vm1546_vm0, %v2170_v37, %v2345_v48 }
 0x38e   : > { %2436 = vst.msk [vmem:[%s4342_s16 + $0x38] sm:$0xff] %vm2428_vm10, %v2411_v63  ;;  %2435 = vst.msk [vmem:[%s4342_s16 + $0x30] sm:$0xff] %vm2428_vm10, %v2410_v21 }
 0x390   : > { %v2351_v8 = vpop.permute.xlu1 %2350  ;;  %v2349_v27 = vpop.permute.xlu0 %2348 }
 0x391   : > { %v2413_v5 = vsel %vm1546_vm0, %v2173_v34, %v2351_v8  ;;  %v2412_v10 = vsel %vm1546_vm0, %v2172_v43, %v2349_v27 }
 0x392   : > { %2438 = vst.msk [vmem:[%s4342_s16 + $0x48] sm:$0xff] %vm2428_vm10, %v2413_v5  ;;  %2437 = vst.msk [vmem:[%s4342_s16 + $0x40] sm:$0xff] %vm2428_vm10, %v2412_v10 }
 0x394   : > { %v2355_v53 = vpop.permute.xlu1 %2354  ;;  %v2353_v56 = vpop.permute.xlu0 %2352 }
 0x395   : > { %v2415_v25 = vsel %vm1546_vm0, %v2175_v14, %v2355_v53  ;;  %v2414_v31 = vsel %vm1546_vm0, %v2174_v50, %v2353_v56 }
 0x396   : > { %2440 = vst.msk [vmem:[%s4342_s16 + $0x58] sm:$0xff] %vm2428_vm10, %v2415_v25  ;;  %2439 = vst.msk [vmem:[%s4342_s16 + $0x50] sm:$0xff] %vm2428_vm10, %v2414_v31 }
 0x398   : > { %v2359_v22 = vpop.permute.xlu1 %2358  ;;  %v2357_v23 = vpop.permute.xlu0 %2356 }
 0x399   : > { %v2417_v57 = vsel %vm1546_vm0, %v2177_v60, %v2359_v22  ;;  %v2416_v24 = vsel %vm1546_vm0, %v2176_v30, %v2357_v23 }
 0x39a   : > { %2442 = vst.msk [vmem:[%s4342_s16 + $0x68] sm:$0xff] %vm2428_vm10, %v2417_v57  ;;  %2441 = vst.msk [vmem:[%s4342_s16 + $0x60] sm:$0xff] %vm2428_vm10, %v2416_v24 }
 0x39c   : > { %v2363_v54 = vpop.permute.xlu1 %2362  ;;  %v2361_v42 = vpop.permute.xlu0 %2360 }
 0x39d   : > { %v2419_v41 = vsel %vm1546_vm0, %v2179_v16, %v2363_v54  ;;  %v2418_v28 = vsel %vm1546_vm0, %v2178_v59, %v2361_v42 }
 0x39e   : > { %2444 = vst.msk [vmem:[%s4342_s16 + $0x78] sm:$0xff] %vm2428_vm10, %v2419_v41  ;;  %2443 = vst.msk [vmem:[%s4342_s16 + $0x70] sm:$0xff] %vm2428_vm10, %v2418_v28 }
 0x3a0   : > { %v2367_v15 = vpop.permute.xlu1 %2366  ;;  %v2365_v13 = vpop.permute.xlu0 %2364 }
 0x3a1   : > { %v2421_v19 = vsel %vm1546_vm0, %v2181_v61, %v2367_v15  ;;  %v2420_v32 = vsel %vm1546_vm0, %v2180_v35, %v2365_v13 }
 0x3a2   : > { %2446 = vst.msk [vmem:[%s4342_s16 + $0x88] sm:$0xff] %vm2428_vm10, %v2421_v19  ;;  %2445 = vst.msk [vmem:[%s4342_s16 + $0x80] sm:$0xff] %vm2428_vm10, %v2420_v32 }
 0x3a4   : > { %v2371_v18 = vpop.permute.xlu1 %2370  ;;  %v2369_v2 = vpop.permute.xlu0 %2368 }
 0x3a5   : > { %v2423_v62 = vsel %vm1546_vm0, %v2183_v0, %v2371_v18  ;;  %v2422_v39 = vsel %vm1546_vm0, %v2182_v17, %v2369_v2 }
 0x3a6   : > { %2448 = vst.msk [vmem:[%s4342_s16 + $0x98] sm:$0xff] %vm2428_vm10, %v2423_v62  ;;  %2447 = vst.msk [vmem:[%s4342_s16 + $0x90] sm:$0xff] %vm2428_vm10, %v2422_v39 }
 0x3a8   : > { %v2375_v1 = vpop.permute.xlu1 %2374  ;;  %v2373_v12 = vpop.permute.xlu0 %2372 }
 0x3a9   : > { %v2425_v33 = vsel %vm1546_vm0, %v2185_v38, %v2375_v1  ;;  %v2424_v29 = vsel %vm1546_vm0, %v2184_v40, %v2373_v12 }
 0x3aa   : > { %2450 = vst.msk [vmem:[%s4342_s16 + $0xa8] sm:$0xff] %vm2428_vm10, %v2425_v33  ;;  %2449 = vst.msk [vmem:[%s4342_s16 + $0xa0] sm:$0xff] %vm2428_vm10, %v2424_v29 }
 0x3ac   : > { %v2379_v11 = vpop.permute.xlu1 %2378  ;;  %v2377_v36 = vpop.permute.xlu0 %2376 }
 0x3ad   : > { %v2427_v26 = vsel %vm1546_vm0, %v2187_v46, %v2379_v11  ;;  %v2426_v3 = vsel %vm1546_vm0, %v2186_v44, %v2377_v36 }
 0x3ae   : > { %2452 = vst.msk [vmem:[%s4342_s16 + $0xb8] sm:$0xff] %vm2428_vm10, %v2427_v26  ;;  %2451 = vst.msk [vmem:[%s4342_s16 + $0xb0] sm:$0xff] %vm2428_vm10, %v2426_v3 }
 0x3af PF: > { %s19_s26 = sadd.s32 1, %s3438_s26   ;;  %s4491_s21 = smov %s3422_s22 }
 0x3b0   : > { %p16_p8 = scmp.ge.s32.totalorder %s19_s26, 4   ;;  %s4492_s22 = smov %s3426_s23 }
 0x3b1   : > { %s4493_s23 = smov %s3526_s8  ;;  %s4494_s24 = smov %s3434_s25 }
 0x3b2   : > { %s4495_s25 = smov %s4497_s28  ;;  %18 = sbr.rel (!%p16_p8) target bundleno = 4 (0x4), region = 87 }
 0x3b7   :  { %2475 = vsyncpa [#allocation3], 1 }
 0x3b8   :  { %2477 = vsyncpa [#allocation3 + $0x1], 1 }

</bundles_post_ra>
